<compile_context>
chip_gen: v7x
topology: tpu7x:2x2x1
jax: 0.10.0
libtpu: 0.0.40
codegen_flags: <defaults>
</compile_context>

<pallas_src>
import math

import jax
import jax.numpy as jnp
from jax.experimental import pallas as pl
from jax.experimental.pallas import tpu as pltpu


NUM_HIDDEN = 32                      # H
NUM_IN = 64                          # edge feature dim
NUM_HEADS = 4                        # nh
HEAD_DIM = NUM_HIDDEN // NUM_HEADS   # d
INV_SQRT_D = 1.0 / math.sqrt(HEAD_DIM)
BN_EPS = 1e-5
NEG_BIG = -1e30                      # finite "-inf" for the running stabilizer


def _gnn_kernel(crow_ref, ccol_ref, hE_ref, hV_ref,
                wq_ref, wkv_ref, wo_ref, rexp_ref, rexpT_ref,
                w1_ref, b1_ref, w2_ref, b2_ref,
                g0_ref, be0_ref, g1_ref, be1_ref,
                out_ref,
                q_s, z_s, c_s):
    f32 = jnp.float32
    bf16 = jnp.bfloat16
    H = NUM_HIDDEN
    nh = NUM_HEADS
    N = hV_ref.shape[0]
    TE = hE_ref.shape[0]

    e_step = pl.program_id(0)

    # ---------------- one-time init: Q projection + accumulators ----------------
    @pl.when(e_step == 0)
    def _init():
        # bf16 MXU matmul, f32 accumulate; Q is consumed as a bf16 operand later anyway.
        q = jnp.dot(hV_ref[...].astype(bf16), wq_ref[...],
                    preferred_element_type=f32)                              # [N, H]
        q_s[...] = q.astype(bf16)
        z_s[...] = jnp.zeros_like(z_s)                                       # [N, nh+H]
        c_s[...] = jnp.full_like(c_s, NEG_BIG)                               # [1, nh]

    # ---------------- per-edge-block attention accumulation ----------------
    crow = crow_ref[...]                                                     # [1, TE] int32
    ccol = ccol_ref[...]                                                     # [TE, 1] int32
    # one-hot gather/scatter blocks built in VMEM (no O(N*E) HBM traffic); padded edges (id = -1)
    # produce all-zero columns/rows so they contribute nothing.
    m = (jax.lax.broadcasted_iota(jnp.int32, (N, TE), 0) == crow).astype(bf16)    # [N, TE]
    mT = (jax.lax.broadcasted_iota(jnp.int32, (TE, N), 1) == ccol).astype(bf16)   # [TE, N]

    # fused K/V projection: one bf16 MXU matmul, f32 accumulate
    kv = jnp.dot(hE_ref[...], wkv_ref[...], preferred_element_type=f32)      # [TE, 2H]
    K = kv[:, :H]
    V = kv[:, H:]

    # gather Q[center] for the edges of this block (bf16 MXU matmul)
    Qg = jnp.dot(mT, q_s[...], preferred_element_type=f32)                   # [TE, H]

    # per-edge / per-head attention logits, all heads at once (1/sqrt(d) folded into rexpT)
    L = jnp.dot(Qg * K, rexpT_ref[...], preferred_element_type=f32)          # [TE, nh]

    # flash-style running per-head scalar stabilizer (global max instead of per-segment max;
    # softmax values are identical up to fp rounding)
    c_blk = jnp.max(L, axis=0, keepdims=True)                                # [1, nh]
    c_old = c_s[...]
    c_new = jnp.maximum(c_old, c_blk)
    scale = jnp.exp(c_old - c_new)                                           # [1, nh]
    scale_full = jnp.concatenate(
        [scale, jnp.dot(scale, rexp_ref[...], preferred_element_type=f32)], axis=1)  # [1, nh+H]
    c_s[...] = c_new

    ex = jnp.exp(L - c_new)                                                  # [TE, nh]
    exV = jnp.dot(ex, rexp_ref[...], preferred_element_type=f32) * V         # [TE, H]
    payload = jnp.concatenate([ex, exV], axis=1).astype(bf16)                # [TE, nh+H]
    # single segment-sum matmul covering both the softmax denominator and the weighted-V sum
    z_s[...] = z_s[...] * scale_full + jnp.dot(m, payload, preferred_element_type=f32)

    # ---------------- epilogue on the last edge block ----------------
    @pl.when(e_step == pl.num_programs(0) - 1)
    def _finalize():
        Z = z_s[...]                                                         # [N, nh+H]
        den = jnp.maximum(Z[:, :nh], 1e-30)     # isolated nodes: 0/den -> 0 (matches scatter_sum)
        inv = pl.reciprocal(den, approx=False)                               # [N, nh]
        agg = Z[:, nh:] * jnp.dot(inv, rexp_ref[...], preferred_element_type=f32)   # [N, H]
        dh = jnp.dot(agg, wo_ref[...], preferred_element_type=f32)           # W_O (no bias)

        # residual + BatchNorm1d (training-mode batch stats, biased var), scale folded
        x = hV_ref[...] + dh
        mu = jnp.mean(x, axis=0, keepdims=True)
        xc = x - mu
        var = jnp.mean(xc * xc, axis=0, keepdims=True)
        s0 = g0_ref[...] * jax.lax.rsqrt(var + BN_EPS)
        y = xc * s0 + be0_ref[...]

        # dense MLP: Linear(H,4H) -> ReLU -> Linear(4H,H)
        h1 = jnp.maximum(jnp.dot(y, w1_ref[...], preferred_element_type=f32) + b1_ref[...], 0.0)
        dh2 = jnp.dot(h1, w2_ref[...], preferred_element_type=f32) + b2_ref[...]

        # residual + BatchNorm1d
        x2 = y + dh2
        mu2 = jnp.mean(x2, axis=0, keepdims=True)
        x2c = x2 - mu2
        var2 = jnp.mean(x2c * x2c, axis=0, keepdims=True)
        s1 = g1_ref[...] * jax.lax.rsqrt(var2 + BN_EPS)
        out_ref[...] = x2c * s1 + be1_ref[...]


def init_params(key):
    ks = jax.random.split(key, 8)
    H, I = NUM_HIDDEN, NUM_IN

    def lin(k, fan_in, fan_out):
        return (jax.random.normal(k, (fan_in, fan_out), jnp.float32)
                / math.sqrt(fan_in)).astype(jnp.float32)

    return {
        "W_Q": lin(ks[0], H, H),           # applied as x @ W (PyTorch Linear weight transposed)
        "W_K": lin(ks[1], I, H),
        "W_V": lin(ks[2], I, H),
        "W_O": lin(ks[3], H, H),
        "W1": lin(ks[4], H, 4 * H),
        "b1": jnp.zeros((1, 4 * H), jnp.float32),
        "W2": lin(ks[5], 4 * H, H),
        "b2": jnp.zeros((1, H), jnp.float32),
        # BatchNorm1d default init: weight=1, bias=0
        "g0": jnp.ones((1, H), jnp.float32),
        "be0": jnp.zeros((1, H), jnp.float32),
        "g1": jnp.ones((1, H), jnp.float32),
        "be1": jnp.zeros((1, H), jnp.float32),
    }


def _pick_edge_tile(N, E):
    """Edge-block size: multiple of 128 lanes, capped so the transient [N, TE] one-hot tiles
    (2 of them, bf16) stay within a fixed VMEM budget for large graphs."""
    budget = 8 * 1024 * 1024
    if 4 * N * 512 <= budget:
        cap = 512
    elif 4 * N * 256 <= budget:
        cap = 256
    else:
        cap = 128
    return min(cap, ((E + 127) // 128) * 128)


@jax.jit
def gnn_module_forward(h_V, h_E, edge_idx, batch_id, params):
    del batch_id  # unused by the forward pass (dropout p=0)
    N, H = h_V.shape
    E = h_E.shape[0]
    nh = NUM_HEADS

    center = edge_idx[0].astype(jnp.int32)

    TE = _pick_edge_tile(N, E)
    E_pad = ((E + TE - 1) // TE) * TE
    num_blocks = E_pad // TE

    # pad edges; padded center ids = -1 never match a node -> zero one-hot columns/rows
    center_pad = jnp.full((E_pad,), -1, jnp.int32).at[:E].set(center)
    crow = center_pad.reshape(1, E_pad)                      # [1, E_pad]
    ccol = center_pad.reshape(E_pad, 1)                      # [E_pad, 1]
    hE_pad = jnp.zeros((E_pad, NUM_IN), jnp.bfloat16).at[:E].set(h_E.astype(jnp.bfloat16))

    # head -> lane-block expansion matrices: rexp[h, j] = 1 iff j // HEAD_DIM == h
    rexp = (jnp.arange(H, dtype=jnp.int32)[None, :] // HEAD_DIM
            == jnp.arange(nh, dtype=jnp.int32)[:, None]).astype(jnp.float32)   # [nh, H]
    rexpT = rexp.T * jnp.float32(INV_SQRT_D)                  # [H, nh], 1/sqrt(d) folded in

    # bf16 MXU operands (f32 accumulation in-kernel)
    wq = params["W_Q"].astype(jnp.bfloat16)                                             # [H, H]
    wkv = jnp.concatenate([params["W_K"], params["W_V"]], axis=1).astype(jnp.bfloat16)  # [I, 2H]

    grid_spec = pltpu.PrefetchScalarGridSpec(
        num_scalar_prefetch=0,
        grid=(num_blocks,),
        in_specs=[
            pl.BlockSpec((1, TE), lambda e: (0, e)),           # center ids (row)
            pl.BlockSpec((TE, 1), lambda e: (e, 0)),           # center ids (col)
            pl.BlockSpec((TE, NUM_IN), lambda e: (e, 0)),      # h_E (bf16, streamed)
            pl.BlockSpec((N, H), lambda e: (0, 0)),            # h_V (resident)
            pl.BlockSpec((H, H), lambda e: (0, 0)),            # W_Q (bf16)
            pl.BlockSpec((NUM_IN, 2 * H), lambda e: (0, 0)),   # W_KV (bf16)
            pl.BlockSpec((H, H), lambda e: (0, 0)),            # W_O
            pl.BlockSpec((nh, H), lambda e: (0, 0)),           # rexp
            pl.BlockSpec((H, nh), lambda e: (0, 0)),           # rexpT (scaled)
            pl.BlockSpec((H, 4 * H), lambda e: (0, 0)),        # W1
            pl.BlockSpec((1, 4 * H), lambda e: (0, 0)),        # b1
            pl.BlockSpec((4 * H, H), lambda e: (0, 0)),        # W2
            pl.BlockSpec((1, H), lambda e: (0, 0)),            # b2
            pl.BlockSpec((1, H), lambda e: (0, 0)),            # g0
            pl.BlockSpec((1, H), lambda e: (0, 0)),            # be0
            pl.BlockSpec((1, H), lambda e: (0, 0)),            # g1
            pl.BlockSpec((1, H), lambda e: (0, 0)),            # be1
        ],
        out_specs=pl.BlockSpec((N, H), lambda e: (0, 0)),
        scratch_shapes=[
            pltpu.VMEM((N, H), jnp.bfloat16),                  # Q projection (bf16 MXU operand)
            pltpu.VMEM((N, nh + H), jnp.float32),              # fused [den | weighted-V] accumulator
            pltpu.VMEM((1, nh), jnp.float32),                  # running per-head softmax stabilizer
        ],
    )

    out = pl.pallas_call(
        _gnn_kernel,
        out_shape=jax.ShapeDtypeStruct((N, H), jnp.float32),
        grid_spec=grid_spec,
        compiler_params=pltpu.CompilerParams(
            dimension_semantics=("arbitrary",),                # edge axis is a reduction
            vmem_limit_bytes=32 * 1024 * 1024,
        ),
    )(crow, ccol, hE_pad, h_V.astype(jnp.float32),
      wq, wkv, params["W_O"], rexp, rexpT,
      params["W1"], params["b1"], params["W2"], params["b2"],
      params["g0"], params["be0"], params["g1"], params["be1"])
    return out


if __name__ == "__main__":
    key = jax.random.PRNGKey(0)
    k_hv, k_he, k_e, k_p = jax.random.split(key, 4)

    N, E = 8, 32
    h_V = jax.random.normal(k_hv, (N, NUM_HIDDEN), jnp.float32)
    h_E = jax.random.normal(k_he, (E, NUM_IN), jnp.float32)
    center = jax.random.randint(k_e, (E,), 0, N, dtype=jnp.int32)
    edge_idx = jnp.stack([center, jnp.zeros((E,), jnp.int32)], axis=0)   # [2, E]
    batch_id = jnp.zeros((N,), jnp.int32)

    params = init_params(k_p)

    out = gnn_module_forward(h_V, h_E, edge_idx, batch_id, params)
    jax.block_until_ready(out)
    assert out.shape == (N, NUM_HIDDEN)
    assert bool(jnp.all(jnp.isfinite(out)))
    print("KERNEL_OK")
</pallas_src>

<mosaic_0001>
module attributes {stable_mosaic.version = 11 : i64} {
  func.func @_gnn_kernel(%arg0: i32, %arg1: memref<1x128xi32, #tpu.memory_space<vmem>>, %arg2: memref<128x1xi32, #tpu.memory_space<vmem>>, %arg3: memref<128x64xbf16, #tpu.memory_space<vmem>>, %arg4: memref<8x32xf32, #tpu.memory_space<vmem>>, %arg5: memref<32x32xbf16, #tpu.memory_space<vmem>>, %arg6: memref<64x64xbf16, #tpu.memory_space<vmem>>, %arg7: memref<32x32xf32, #tpu.memory_space<vmem>>, %arg8: memref<4x32xf32, #tpu.memory_space<vmem>>, %arg9: memref<32x4xf32, #tpu.memory_space<vmem>>, %arg10: memref<32x128xf32, #tpu.memory_space<vmem>>, %arg11: memref<1x128xf32, #tpu.memory_space<vmem>>, %arg12: memref<128x32xf32, #tpu.memory_space<vmem>>, %arg13: memref<1x32xf32, #tpu.memory_space<vmem>>, %arg14: memref<1x32xf32, #tpu.memory_space<vmem>>, %arg15: memref<1x32xf32, #tpu.memory_space<vmem>>, %arg16: memref<1x32xf32, #tpu.memory_space<vmem>>, %arg17: memref<1x32xf32, #tpu.memory_space<vmem>>, %arg18: memref<8x32xf32, #tpu.memory_space<vmem>>, %arg19: memref<8x32xbf16, #tpu.memory_space<vmem>>, %arg20: memref<8x36xf32, #tpu.memory_space<vmem>>, %arg21: memref<1x4xf32, #tpu.memory_space<vmem>>) attributes {dimension_semantics = [#tpu.dimension_semantics<arbitrary>], iteration_bounds = array<i64: 1>, scalar_prefetch = 0 : i64, scratch_operands = 3 : i64, tpu.core_type = #tpu.core_type<tc>, window_params = [{transform_indices = @transform_0, window_bounds = array<i64: 1, 128>}, {transform_indices = @transform_1, window_bounds = array<i64: 128, 1>}, {transform_indices = @transform_2, window_bounds = array<i64: 128, 64>}, {pipeline_mode = #tpu.pipeline_mode<synchronous>, transform_indices = @transform_3, window_bounds = array<i64: 8, 32>}, {pipeline_mode = #tpu.pipeline_mode<synchronous>, transform_indices = @transform_4, window_bounds = array<i64: 32, 32>}, {pipeline_mode = #tpu.pipeline_mode<synchronous>, transform_indices = @transform_5, window_bounds = array<i64: 64, 64>}, {pipeline_mode = #tpu.pipeline_mode<synchronous>, transform_indices = @transform_6, window_bounds = array<i64: 32, 32>}, {pipeline_mode = #tpu.pipeline_mode<synchronous>, transform_indices = @transform_7, window_bounds = array<i64: 4, 32>}, {pipeline_mode = #tpu.pipeline_mode<synchronous>, transform_indices = @transform_8, window_bounds = array<i64: 32, 4>}, {pipeline_mode = #tpu.pipeline_mode<synchronous>, transform_indices = @transform_9, window_bounds = array<i64: 32, 128>}, {pipeline_mode = #tpu.pipeline_mode<synchronous>, transform_indices = @transform_10, window_bounds = array<i64: 1, 128>}, {pipeline_mode = #tpu.pipeline_mode<synchronous>, transform_indices = @transform_11, window_bounds = array<i64: 128, 32>}, {pipeline_mode = #tpu.pipeline_mode<synchronous>, transform_indices = @transform_12, window_bounds = array<i64: 1, 32>}, {pipeline_mode = #tpu.pipeline_mode<synchronous>, transform_indices = @transform_13, window_bounds = array<i64: 1, 32>}, {pipeline_mode = #tpu.pipeline_mode<synchronous>, transform_indices = @transform_14, window_bounds = array<i64: 1, 32>}, {pipeline_mode = #tpu.pipeline_mode<synchronous>, transform_indices = @transform_15, window_bounds = array<i64: 1, 32>}, {pipeline_mode = #tpu.pipeline_mode<synchronous>, transform_indices = @transform_16, window_bounds = array<i64: 1, 32>}, {pipeline_mode = #tpu.pipeline_mode<synchronous>, transform_indices = @transform_17, window_bounds = array<i64: 8, 32>}]} {
    %c0_i32 = arith.constant 0 : i32
    %0 = arith.cmpi eq, %arg0, %c0_i32 : i32
    %1 = arith.extui %0 : i1 to i32
    %c0_i32_0 = arith.constant 0 : i32
    %2 = arith.cmpi ne, %1, %c0_i32_0 : i32
    scf.if %2 {
      %c0_32 = arith.constant 0 : index
      %c0_33 = arith.constant 0 : index
      %54 = vector.load %arg4[%c0_32, %c0_33] : memref<8x32xf32, #tpu.memory_space<vmem>>, vector<8x32xf32>
      %55 = arith.truncf %54 : vector<8x32xf32> to vector<8x32xbf16>
      %c0_34 = arith.constant 0 : index
      %c0_35 = arith.constant 0 : index
      %56 = vector.load %arg5[%c0_34, %c0_35] : memref<32x32xbf16, #tpu.memory_space<vmem>>, vector<32x32xbf16>
      %cst_36 = arith.constant dense<0.000000e+00> : vector<8x32xf32>
      %57 = tpu.matmul %55, %56, %cst_36 {dimension_numbers = #tpu.dot_dimension_numbers<[1], [0], [0], [1], [0, 0, 1, 1], [], []>} : vector<8x32xbf16>, vector<32x32xbf16>, vector<8x32xf32> -> vector<8x32xf32>
      %58 = arith.truncf %57 : vector<8x32xf32> to vector<8x32xbf16>
      %c0_37 = arith.constant 0 : index
      %c0_38 = arith.constant 0 : index
      %59 = vector.load %arg19[%c0_37, %c0_38] : memref<8x32xbf16, #tpu.memory_space<vmem>>, vector<8x32xbf16>
      tpu.vector_store %arg19[%c0_37, %c0_38], %58 {strides = array<i32>} : memref<8x32xbf16, #tpu.memory_space<vmem>>, vector<8x32xbf16>,
      %cst_39 = arith.constant 0.000000e+00 : f32
      %60 = vector.broadcast %cst_39 : f32 to vector<8x36xf32>
      %c0_40 = arith.constant 0 : index
      %c0_41 = arith.constant 0 : index
      %61 = vector.load %arg20[%c0_40, %c0_41] : memref<8x36xf32, #tpu.memory_space<vmem>>, vector<8x36xf32>
      tpu.vector_store %arg20[%c0_40, %c0_41], %60 {strides = array<i32>} : memref<8x36xf32, #tpu.memory_space<vmem>>, vector<8x36xf32>,
      %cst_42 = arith.constant -1.000000e+30 : f32
      %62 = vector.broadcast %cst_42 : f32 to vector<1x4xf32>
      %c0_43 = arith.constant 0 : index
      %c0_44 = arith.constant 0 : index
      %63 = vector.load %arg21[%c0_43, %c0_44] : memref<1x4xf32, #tpu.memory_space<vmem>>, vector<1x4xf32>
      tpu.vector_store %arg21[%c0_43, %c0_44], %62 {strides = array<i32>} : memref<1x4xf32, #tpu.memory_space<vmem>>, vector<1x4xf32>,
    } else {
    }
    %c0 = arith.constant 0 : index
    %c0_1 = arith.constant 0 : index
    %3 = vector.load %arg1[%c0, %c0_1] : memref<1x128xi32, #tpu.memory_space<vmem>>, vector<1x128xi32>
    %c0_2 = arith.constant 0 : index
    %c0_3 = arith.constant 0 : index
    %4 = vector.load %arg2[%c0_2, %c0_3] : memref<128x1xi32, #tpu.memory_space<vmem>>, vector<128x1xi32>
    %5 = tpu.iota {dimensions = array<i32: 0>} : vector<8x128xi32>
    %6 = vector.broadcast %3 : vector<1x128xi32> to vector<8x128xi32>
    %7 = arith.cmpi eq, %5, %6 : vector<8x128xi32>
    %8 = arith.extui %7 : vector<8x128xi1> to vector<8x128xi32>
    %9 = arith.sitofp %8 : vector<8x128xi32> to vector<8x128xf32>
    %10 = arith.truncf %9 : vector<8x128xf32> to vector<8x128xbf16>
    %11 = tpu.iota {dimensions = array<i32: 1>} : vector<128x8xi32>
    %12 = vector.broadcast %4 : vector<128x1xi32> to vector<128x8xi32>
    %13 = arith.cmpi eq, %11, %12 : vector<128x8xi32>
    %14 = arith.extui %13 : vector<128x8xi1> to vector<128x8xi32>
    %15 = arith.sitofp %14 : vector<128x8xi32> to vector<128x8xf32>
    %16 = arith.truncf %15 : vector<128x8xf32> to vector<128x8xbf16>
    %c0_4 = arith.constant 0 : index
    %c0_5 = arith.constant 0 : index
    %17 = vector.load %arg3[%c0_4, %c0_5] : memref<128x64xbf16, #tpu.memory_space<vmem>>, vector<128x64xbf16>
    %c0_6 = arith.constant 0 : index
    %c0_7 = arith.constant 0 : index
    %18 = vector.load %arg6[%c0_6, %c0_7] : memref<64x64xbf16, #tpu.memory_space<vmem>>, vector<64x64xbf16>
    %cst = arith.constant dense<0.000000e+00> : vector<128x64xf32>
    %19 = tpu.matmul %17, %18, %cst {dimension_numbers = #tpu.dot_dimension_numbers<[1], [0], [0], [1], [0, 0, 1, 1], [], []>} : vector<128x64xbf16>, vector<64x64xbf16>, vector<128x64xf32> -> vector<128x64xf32>
    %20 = vector.extract_strided_slice %19 {offsets = [0, 0], sizes = [128, 32], strides = [1, 1]} : vector<128x64xf32> to vector<128x32xf32>
    %21 = vector.extract_strided_slice %19 {offsets = [0, 32], sizes = [128, 32], strides = [1, 1]} : vector<128x64xf32> to vector<128x32xf32>
    %c0_8 = arith.constant 0 : index
    %c0_9 = arith.constant 0 : index
    %22 = vector.load %arg19[%c0_8, %c0_9] : memref<8x32xbf16, #tpu.memory_space<vmem>>, vector<8x32xbf16>
    %cst_10 = arith.constant dense<0.000000e+00> : vector<128x32xf32>
    %23 = tpu.matmul %16, %22, %cst_10 {dimension_numbers = #tpu.dot_dimension_numbers<[1], [0], [0], [1], [0, 0, 1, 1], [], []>} : vector<128x8xbf16>, vector<8x32xbf16>, vector<128x32xf32> -> vector<128x32xf32>
    %24 = arith.mulf %23, %20 : vector<128x32xf32>
    %c0_11 = arith.constant 0 : index
    %c0_12 = arith.constant 0 : index
    %25 = vector.load %arg9[%c0_11, %c0_12] : memref<32x4xf32, #tpu.memory_space<vmem>>, vector<32x4xf32>
    %cst_13 = arith.constant dense<0.000000e+00> : vector<128x4xf32>
    %26 = tpu.matmul %24, %25, %cst_13 {dimension_numbers = #tpu.dot_dimension_numbers<[1], [0], [0], [1], [0, 0, 1, 1], [], []>} : vector<128x32xf32>, vector<32x4xf32>, vector<128x4xf32> -> vector<128x4xf32>
    %cst_14 = arith.constant dense<0xFF800000> : vector<4xf32>
    %27 = vector.multi_reduction <maximumf>, %26, %cst_14 [0] : vector<128x4xf32> to vector<4xf32>
    %28 = vector.shape_cast %27 : vector<4xf32> to vector<1x4xf32>
    %c0_15 = arith.constant 0 : index
    %c0_16 = arith.constant 0 : index
    %29 = vector.load %arg21[%c0_15, %c0_16] : memref<1x4xf32, #tpu.memory_space<vmem>>, vector<1x4xf32>
    %30 = arith.maximumf %29, %28 : vector<1x4xf32>
    %31 = arith.subf %29, %30 : vector<1x4xf32>
    %32 = math.exp %31 : vector<1x4xf32>
    %c0_17 = arith.constant 0 : index
    %c0_18 = arith.constant 0 : index
    %33 = vector.load %arg8[%c0_17, %c0_18] : memref<4x32xf32, #tpu.memory_space<vmem>>, vector<4x32xf32>
    %cst_19 = arith.constant dense<0.000000e+00> : vector<1x32xf32>
    %34 = tpu.matmul %32, %33, %cst_19 {dimension_numbers = #tpu.dot_dimension_numbers<[1], [0], [0], [1], [0, 0, 1, 1], [], []>} : vector<1x4xf32>, vector<4x32xf32>, vector<1x32xf32> -> vector<1x32xf32>
    %35 = tpu.concatenate %32, %34 in 1 : vector<1x4xf32>, vector<1x32xf32> -> vector<1x36xf32>
    %c0_20 = arith.constant 0 : index
    %c0_21 = arith.constant 0 : index
    %36 = vector.load %arg21[%c0_20, %c0_21] : memref<1x4xf32, #tpu.memory_space<vmem>>, vector<1x4xf32>
    tpu.vector_store %arg21[%c0_20, %c0_21], %30 {strides = array<i32>} : memref<1x4xf32, #tpu.memory_space<vmem>>, vector<1x4xf32>,
    %37 = vector.broadcast %30 : vector<1x4xf32> to vector<128x4xf32>
    %38 = arith.subf %26, %37 : vector<128x4xf32>
    %39 = math.exp %38 : vector<128x4xf32>
    %c0_22 = arith.constant 0 : index
    %c0_23 = arith.constant 0 : index
    %40 = vector.load %arg8[%c0_22, %c0_23] : memref<4x32xf32, #tpu.memory_space<vmem>>, vector<4x32xf32>
    %cst_24 = arith.constant dense<0.000000e+00> : vector<128x32xf32>
    %41 = tpu.matmul %39, %40, %cst_24 {dimension_numbers = #tpu.dot_dimension_numbers<[1], [0], [0], [1], [0, 0, 1, 1], [], []>} : vector<128x4xf32>, vector<4x32xf32>, vector<128x32xf32> -> vector<128x32xf32>
    %42 = arith.mulf %41, %21 : vector<128x32xf32>
    %43 = tpu.concatenate %39, %42 in 1 : vector<128x4xf32>, vector<128x32xf32> -> vector<128x36xf32>
    %44 = arith.truncf %43 : vector<128x36xf32> to vector<128x36xbf16>
    %c0_25 = arith.constant 0 : index
    %c0_26 = arith.constant 0 : index
    %45 = vector.load %arg20[%c0_25, %c0_26] : memref<8x36xf32, #tpu.memory_space<vmem>>, vector<8x36xf32>
    %46 = vector.broadcast %35 : vector<1x36xf32> to vector<8x36xf32>
    %47 = arith.mulf %45, %46 : vector<8x36xf32>
    %cst_27 = arith.constant dense<0.000000e+00> : vector<8x36xf32>
    %48 = tpu.matmul %10, %44, %cst_27 {dimension_numbers = #tpu.dot_dimension_numbers<[1], [0], [0], [1], [0, 0, 1, 1], [], []>} : vector<8x128xbf16>, vector<128x36xbf16>, vector<8x36xf32> -> vector<8x36xf32>
    %49 = arith.addf %47, %48 : vector<8x36xf32>
    %c0_28 = arith.constant 0 : index
    %c0_29 = arith.constant 0 : index
    %50 = vector.load %arg20[%c0_28, %c0_29] : memref<8x36xf32, #tpu.memory_space<vmem>>, vector<8x36xf32>
    tpu.vector_store %arg20[%c0_28, %c0_29], %49 {strides = array<i32>} : memref<8x36xf32, #tpu.memory_space<vmem>>, vector<8x36xf32>,
    %c0_i32_30 = arith.constant 0 : i32
    %51 = arith.cmpi eq, %arg0, %c0_i32_30 : i32
    %52 = arith.extui %51 : i1 to i32
    %c0_i32_31 = arith.constant 0 : i32
    %53 = arith.cmpi ne, %52, %c0_i32_31 : i32
    scf.if %53 {
      %c0_32 = arith.constant 0 : index
      %c0_33 = arith.constant 0 : index
      %54 = vector.load %arg20[%c0_32, %c0_33] : memref<8x36xf32, #tpu.memory_space<vmem>>, vector<8x36xf32>
      %55 = vector.extract_strided_slice %54 {offsets = [0, 0], sizes = [8, 4], strides = [1, 1]} : vector<8x36xf32> to vector<8x4xf32>
      %cst_34 = arith.constant 1.000000e-30 : f32
      %56 = vector.broadcast %cst_34 : f32 to vector<8x4xf32>
      %57 = arith.maximumf %55, %56 : vector<8x4xf32>
      %58 = tpu.reciprocal %57 : vector<8x4xf32> -> vector<8x4xf32>
      %59 = vector.extract_strided_slice %54 {offsets = [0, 4], sizes = [8, 32], strides = [1, 1]} : vector<8x36xf32> to vector<8x32xf32>
      %c0_35 = arith.constant 0 : index
      %c0_36 = arith.constant 0 : index
      %60 = vector.load %arg8[%c0_35, %c0_36] : memref<4x32xf32, #tpu.memory_space<vmem>>, vector<4x32xf32>
      %cst_37 = arith.constant dense<0.000000e+00> : vector<8x32xf32>
      %61 = tpu.matmul %58, %60, %cst_37 {dimension_numbers = #tpu.dot_dimension_numbers<[1], [0], [0], [1], [0, 0, 1, 1], [], []>} : vector<8x4xf32>, vector<4x32xf32>, vector<8x32xf32> -> vector<8x32xf32>
      %62 = arith.mulf %59, %61 : vector<8x32xf32>
      %c0_38 = arith.constant 0 : index
      %c0_39 = arith.constant 0 : index
      %63 = vector.load %arg7[%c0_38, %c0_39] : memref<32x32xf32, #tpu.memory_space<vmem>>, vector<32x32xf32>
      %cst_40 = arith.constant dense<0.000000e+00> : vector<8x32xf32>
      %64 = tpu.matmul %62, %63, %cst_40 {dimension_numbers = #tpu.dot_dimension_numbers<[1], [0], [0], [1], [0, 0, 1, 1], [], []>} : vector<8x32xf32>, vector<32x32xf32>, vector<8x32xf32> -> vector<8x32xf32>
      %c0_41 = arith.constant 0 : index
      %c0_42 = arith.constant 0 : index
      %65 = vector.load %arg4[%c0_41, %c0_42] : memref<8x32xf32, #tpu.memory_space<vmem>>, vector<8x32xf32>
      %66 = arith.addf %65, %64 : vector<8x32xf32>
      %cst_43 = arith.constant dense<0.000000e+00> : vector<32xf32>
      %67 = vector.multi_reduction <add>, %66, %cst_43 [0] : vector<8x32xf32> to vector<32xf32>
      %68 = vector.shape_cast %67 : vector<32xf32> to vector<1x32xf32>
      %cst_44 = arith.constant 8.000000e+00 : f32
      %69 = vector.broadcast %cst_44 : f32 to vector<1x32xf32>
      %70 = arith.divf %68, %69 : vector<1x32xf32>
      %71 = vector.broadcast %70 : vector<1x32xf32> to vector<8x32xf32>
      %72 = arith.subf %66, %71 : vector<8x32xf32>
      %73 = arith.mulf %72, %72 : vector<8x32xf32>
      %cst_45 = arith.constant dense<0.000000e+00> : vector<32xf32>
      %74 = vector.multi_reduction <add>, %73, %cst_45 [0] : vector<8x32xf32> to vector<32xf32>
      %75 = vector.shape_cast %74 : vector<32xf32> to vector<1x32xf32>
      %cst_46 = arith.constant 8.000000e+00 : f32
      %76 = vector.broadcast %cst_46 : f32 to vector<1x32xf32>
      %77 = arith.divf %75, %76 : vector<1x32xf32>
      %c0_47 = arith.constant 0 : index
      %c0_48 = arith.constant 0 : index
      %78 = vector.load %arg14[%c0_47, %c0_48] : memref<1x32xf32, #tpu.memory_space<vmem>>, vector<1x32xf32>
      %cst_49 = arith.constant 9.99999974E-6 : f32
      %79 = vector.broadcast %cst_49 : f32 to vector<1x32xf32>
      %80 = arith.addf %77, %79 : vector<1x32xf32>
      %81 = math.rsqrt %80 : vector<1x32xf32>
      %82 = arith.mulf %78, %81 : vector<1x32xf32>
      %83 = vector.broadcast %82 : vector<1x32xf32> to vector<8x32xf32>
      %84 = arith.mulf %72, %83 : vector<8x32xf32>
      %c0_50 = arith.constant 0 : index
      %c0_51 = arith.constant 0 : index
      %85 = vector.load %arg15[%c0_50, %c0_51] : memref<1x32xf32, #tpu.memory_space<vmem>>, vector<1x32xf32>
      %86 = vector.broadcast %85 : vector<1x32xf32> to vector<8x32xf32>
      %87 = arith.addf %84, %86 : vector<8x32xf32>
      %c0_52 = arith.constant 0 : index
      %c0_53 = arith.constant 0 : index
      %88 = vector.load %arg10[%c0_52, %c0_53] : memref<32x128xf32, #tpu.memory_space<vmem>>, vector<32x128xf32>
      %cst_54 = arith.constant dense<0.000000e+00> : vector<8x128xf32>
      %89 = tpu.matmul %87, %88, %cst_54 {dimension_numbers = #tpu.dot_dimension_numbers<[1], [0], [0], [1], [0, 0, 1, 1], [], []>} : vector<8x32xf32>, vector<32x128xf32>, vector<8x128xf32> -> vector<8x128xf32>
      %c0_55 = arith.constant 0 : index
      %c0_56 = arith.constant 0 : index
      %90 = vector.load %arg11[%c0_55, %c0_56] : memref<1x128xf32, #tpu.memory_space<vmem>>, vector<1x128xf32>
      %91 = vector.broadcast %90 : vector<1x128xf32> to vector<8x128xf32>
      %92 = arith.addf %89, %91 : vector<8x128xf32>
      %cst_57 = arith.constant 0.000000e+00 : f32
      %93 = vector.broadcast %cst_57 : f32 to vector<8x128xf32>
      %94 = arith.maximumf %92, %93 : vector<8x128xf32>
      %c0_58 = arith.constant 0 : index
      %c0_59 = arith.constant 0 : index
      %95 = vector.load %arg12[%c0_58, %c0_59] : memref<128x32xf32, #tpu.memory_space<vmem>>, vector<128x32xf32>
      %cst_60 = arith.constant dense<0.000000e+00> : vector<8x32xf32>
      %96 = tpu.matmul %94, %95, %cst_60 {dimension_numbers = #tpu.dot_dimension_numbers<[1], [0], [0], [1], [0, 0, 1, 1], [], []>} : vector<8x128xf32>, vector<128x32xf32>, vector<8x32xf32> -> vector<8x32xf32>
      %c0_61 = arith.constant 0 : index
      %c0_62 = arith.constant 0 : index
      %97 = vector.load %arg13[%c0_61, %c0_62] : memref<1x32xf32, #tpu.memory_space<vmem>>, vector<1x32xf32>
      %98 = vector.broadcast %97 : vector<1x32xf32> to vector<8x32xf32>
      %99 = arith.addf %96, %98 : vector<8x32xf32>
      %100 = arith.addf %87, %99 : vector<8x32xf32>
      %cst_63 = arith.constant dense<0.000000e+00> : vector<32xf32>
      %101 = vector.multi_reduction <add>, %100, %cst_63 [0] : vector<8x32xf32> to vector<32xf32>
      %102 = vector.shape_cast %101 : vector<32xf32> to vector<1x32xf32>
      %cst_64 = arith.constant 8.000000e+00 : f32
      %103 = vector.broadcast %cst_64 : f32 to vector<1x32xf32>
      %104 = arith.divf %102, %103 : vector<1x32xf32>
      %105 = vector.broadcast %104 : vector<1x32xf32> to vector<8x32xf32>
      %106 = arith.subf %100, %105 : vector<8x32xf32>
      %107 = arith.mulf %106, %106 : vector<8x32xf32>
      %cst_65 = arith.constant dense<0.000000e+00> : vector<32xf32>
      %108 = vector.multi_reduction <add>, %107, %cst_65 [0] : vector<8x32xf32> to vector<32xf32>
      %109 = vector.shape_cast %108 : vector<32xf32> to vector<1x32xf32>
      %cst_66 = arith.constant 8.000000e+00 : f32
      %110 = vector.broadcast %cst_66 : f32 to vector<1x32xf32>
      %111 = arith.divf %109, %110 : vector<1x32xf32>
      %c0_67 = arith.constant 0 : index
      %c0_68 = arith.constant 0 : index
      %112 = vector.load %arg16[%c0_67, %c0_68] : memref<1x32xf32, #tpu.memory_space<vmem>>, vector<1x32xf32>
      %cst_69 = arith.constant 9.99999974E-6 : f32
      %113 = vector.broadcast %cst_69 : f32 to vector<1x32xf32>
      %114 = arith.addf %111, %113 : vector<1x32xf32>
      %115 = math.rsqrt %114 : vector<1x32xf32>
      %116 = arith.mulf %112, %115 : vector<1x32xf32>
      %117 = vector.broadcast %116 : vector<1x32xf32> to vector<8x32xf32>
      %118 = arith.mulf %106, %117 : vector<8x32xf32>
      %c0_70 = arith.constant 0 : index
      %c0_71 = arith.constant 0 : index
      %119 = vector.load %arg17[%c0_70, %c0_71] : memref<1x32xf32, #tpu.memory_space<vmem>>, vector<1x32xf32>
      %120 = vector.broadcast %119 : vector<1x32xf32> to vector<8x32xf32>
      %121 = arith.addf %118, %120 : vector<8x32xf32>
      %c0_72 = arith.constant 0 : index
      %c0_73 = arith.constant 0 : index
      %122 = vector.load %arg18[%c0_72, %c0_73] : memref<8x32xf32, #tpu.memory_space<vmem>>, vector<8x32xf32>
      tpu.vector_store %arg18[%c0_72, %c0_73], %121 {strides = array<i32>} : memref<8x32xf32, #tpu.memory_space<vmem>>, vector<8x32xf32>,
    } else {
    }
    return
  }
  func.func @transform_0(%arg0: i32) -> (i32, i32) {
    %c0_i32 = arith.constant 0 : i32
    %c0_i32_0 = arith.constant 0 : i32
    return %c0_i32, %arg0 : i32, i32
  }
  func.func @transform_1(%arg0: i32) -> (i32, i32) {
    %c0_i32 = arith.constant 0 : i32
    %c0_i32_0 = arith.constant 0 : i32
    return %arg0, %c0_i32 : i32, i32
  }
  func.func @transform_2(%arg0: i32) -> (i32, i32) {
    %c0_i32 = arith.constant 0 : i32
    %c0_i32_0 = arith.constant 0 : i32
    return %arg0, %c0_i32 : i32, i32
  }
  func.func @transform_3(%arg0: i32) -> (i32, i32) {
    %c0_i32 = arith.constant 0 : i32
    %c0_i32_0 = arith.constant 0 : i32
    %c0_i32_1 = arith.constant 0 : i32
    return %c0_i32, %c0_i32_0 : i32, i32
  }
  func.func @transform_4(%arg0: i32) -> (i32, i32) {
    %c0_i32 = arith.constant 0 : i32
    %c0_i32_0 = arith.constant 0 : i32
    %c0_i32_1 = arith.constant 0 : i32
    return %c0_i32, %c0_i32_0 : i32, i32
  }
  func.func @transform_5(%arg0: i32) -> (i32, i32) {
    %c0_i32 = arith.constant 0 : i32
    %c0_i32_0 = arith.constant 0 : i32
    %c0_i32_1 = arith.constant 0 : i32
    return %c0_i32, %c0_i32_0 : i32, i32
  }
  func.func @transform_6(%arg0: i32) -> (i32, i32) {
    %c0_i32 = arith.constant 0 : i32
    %c0_i32_0 = arith.constant 0 : i32
    %c0_i32_1 = arith.constant 0 : i32
    return %c0_i32, %c0_i32_0 : i32, i32
  }
  func.func @transform_7(%arg0: i32) -> (i32, i32) {
    %c0_i32 = arith.constant 0 : i32
    %c0_i32_0 = arith.constant 0 : i32
    %c0_i32_1 = arith.constant 0 : i32
    return %c0_i32, %c0_i32_0 : i32, i32
  }
  func.func @transform_8(%arg0: i32) -> (i32, i32) {
    %c0_i32 = arith.constant 0 : i32
    %c0_i32_0 = arith.constant 0 : i32
    %c0_i32_1 = arith.constant 0 : i32
    return %c0_i32, %c0_i32_0 : i32, i32
  }
  func.func @transform_9(%arg0: i32) -> (i32, i32) {
    %c0_i32 = arith.constant 0 : i32
    %c0_i32_0 = arith.constant 0 : i32
    %c0_i32_1 = arith.constant 0 : i32
    return %c0_i32, %c0_i32_0 : i32, i32
  }
  func.func @transform_10(%arg0: i32) -> (i32, i32) {
    %c0_i32 = arith.constant 0 : i32
    %c0_i32_0 = arith.constant 0 : i32
    %c0_i32_1 = arith.constant 0 : i32
    return %c0_i32, %c0_i32_0 : i32, i32
  }
  func.func @transform_11(%arg0: i32) -> (i32, i32) {
    %c0_i32 = arith.constant 0 : i32
    %c0_i32_0 = arith.constant 0 : i32
    %c0_i32_1 = arith.constant 0 : i32
    return %c0_i32, %c0_i32_0 : i32, i32
  }
  func.func @transform_12(%arg0: i32) -> (i32, i32) {
    %c0_i32 = arith.constant 0 : i32
    %c0_i32_0 = arith.constant 0 : i32
    %c0_i32_1 = arith.constant 0 : i32
    return %c0_i32, %c0_i32_0 : i32, i32
  }
  func.func @transform_13(%arg0: i32) -> (i32, i32) {
    %c0_i32 = arith.constant 0 : i32
    %c0_i32_0 = arith.constant 0 : i32
    %c0_i32_1 = arith.constant 0 : i32
    return %c0_i32, %c0_i32_0 : i32, i32
  }
  func.func @transform_14(%arg0: i32) -> (i32, i32) {
    %c0_i32 = arith.constant 0 : i32
    %c0_i32_0 = arith.constant 0 : i32
    %c0_i32_1 = arith.constant 0 : i32
    return %c0_i32, %c0_i32_0 : i32, i32
  }
  func.func @transform_15(%arg0: i32) -> (i32, i32) {
    %c0_i32 = arith.constant 0 : i32
    %c0_i32_0 = arith.constant 0 : i32
    %c0_i32_1 = arith.constant 0 : i32
    return %c0_i32, %c0_i32_0 : i32, i32
  }
  func.func @transform_16(%arg0: i32) -> (i32, i32) {
    %c0_i32 = arith.constant 0 : i32
    %c0_i32_0 = arith.constant 0 : i32
    %c0_i32_1 = arith.constant 0 : i32
    return %c0_i32, %c0_i32_0 : i32, i32
  }
  func.func @transform_17(%arg0: i32) -> (i32, i32) {
    %c0_i32 = arith.constant 0 : i32
    %c0_i32_0 = arith.constant 0 : i32
    %c0_i32_1 = arith.constant 0 : i32
    return %c0_i32, %c0_i32_0 : i32, i32
  }
}

</mosaic_0001>

<bundles_post_ra>
// kernel: gnn_module_forward.1
= control target key start
LH: loop header
LB: loop body
LE: loop exit
PB: predicated region body
PF: predicated region fallthrough
CT: control target
= control target key end

     0   :  { %s3076_s0 = inlined_call_operand.vmem [shape: s32[1,128], index: 0, kind: input, shape index: {}]   ;;  %s3077_s1 = inlined_call_operand.vmem [shape: s32[128,1], index: 1, kind: input, shape index: {}]   ;;  %s3078_s2 = inlined_call_operand.vmem [shape: bf16[128,64], index: 2, kind: input, shape index: {}]   ;;  %s3079_s3 = inlined_call_operand.vmem [shape: f32[8,32], index: 3, kind: input, shape index: {}]   ;;  %s3080_s4 = inlined_call_operand.vmem [shape: bf16[32,32], index: 4, kind: input, shape index: {}]   ;;  %s3081_s5 = inlined_call_operand.vmem [shape: bf16[64,64], index: 5, kind: input, shape index: {}]   ;;  %s3082_s6 = inlined_call_operand.vmem [shape: f32[32,32], index: 6, kind: input, shape index: {}]   ;;  %s3083_s7 = inlined_call_operand.vmem [shape: f32[4,32], index: 7, kind: input, shape index: {}]   ;;  %s3084_s8 = inlined_call_operand.vmem [shape: f32[32,4], index: 8, kind: input, shape index: {}]   ;;  %s3085_s9 = inlined_call_operand.vmem [shape: f32[32,128], index: 9, kind: input, shape index: {}]   ;;  %s3086_s10 = inlined_call_operand.vmem [shape: f32[1,128], index: 10, kind: input, shape index: {}]   ;;  %s3087_s11 = inlined_call_operand.vmem [shape: f32[128,32], index: 11, kind: input, shape index: {}]   ;;  %s3088_s12 = inlined_call_operand.vmem [shape: f32[1,32], index: 12, kind: input, shape index: {}]   ;;  %s3089_s13 = inlined_call_operand.vmem [shape: f32[1,32], index: 13, kind: input, shape index: {}]   ;;  %s3090_s14 = inlined_call_operand.vmem [shape: f32[1,32], index: 14, kind: input, shape index: {}]   ;;  %s3091_s15 = inlined_call_operand.vmem [shape: f32[1,32], index: 15, kind: input, shape index: {}]   ;;  %s3092_s16 = inlined_call_operand.vmem [shape: f32[1,32], index: 16, kind: input, shape index: {}]   ;;  %s3093_s17 = inlined_call_operand.hbm [shape: f32[8,32], index: 17, kind: output, shape index: {}]  }
   0x1   :  { %3095 = sst [smem:[#allocation8_spill]] %s3076_s0 }
   0x2   :  { %3096 = sst [smem:[#allocation9_spill]] %s3077_s1 }
   0x3   :  { %v2335_v0 = vld [vmem:[%s3080_s4] sm:$0xff]   ;;  %v2413_v1 = vmov 0.0   ;;  %v2336_v2 = vld [vmem:[%s3080_s4 + $0x8] sm:$0xff]   ;;  %vm2414_vm0 = vmmov 0   ;;  %s3097_s18 = sld [smem:[#allocation9_spill]]  ;;  %v2415_v6 = vmov 0  }
   0x4   :  { %2043 = vmatprep.subr.bf16.mxu1 %v2413_v1  ;;  %2047 = vmatprep.mubr.msk.bf16.mxu1 %vm2414_vm0, %v2413_v1  ;;  %v62_v3 = vld [vmem:[%s3079_s3] sm:$0xff]  ;;  %vm80_vm1 = vcmask 261120  }
   0x5   :  { %2044 = vmatpush3.bf16.msra.mxu1 %v2335_v0  ;;  %2294 = vset.pattern.permute.xlu1 %v2415_v6  ;;  %v63_v7 = vpack.c.bf16 %v62_v3, %v62_v3 }
   0x6   :  { %2045 = vmatprep.subr.bf16.mxu1 %v2413_v1  ;;  %2293 = vset.pattern.permute.xlu0 %v2415_v6 }
   0x9   :  { %v134_v4 = vld [vmem:[%s3097_s18 + $0x10] sm:$0xff]  ;;  %v132_v5 = vld [vmem:[%s3097_s18] sm:$0xff]  ;;  %v135_v8 = vld [vmem:[%s3097_s18 + $0x18] sm:$0xff]  ;;  %2046 = vmatpush3.bf16.msra.mxu1 %v2336_v2 }
   0xa   :  { %167 = vperm.xlu1 %2294, %v134_v4   ;;  %161 = vperm.xlu0 %2293, %v132_v5   ;;  %v133_v9 = vld [vmem:[%s3097_s18 + $0x8] sm:$0xff]  ;;  %v136_v11 = vld [vmem:[%s3097_s18 + $0x20] sm:$0xff]  ;;  %v139_v12 = vld [vmem:[%s3097_s18 + $0x38] sm:$0xff] }
   0xb   :  { %v137_v10 = vld [vmem:[%s3097_s18 + $0x28] sm:$0xff]  ;;  %v138_v13 = vld [vmem:[%s3097_s18 + $0x30] sm:$0xff] }
   0xc   :  { %2048 = vmatmul.mubr.msk.bf16.vlgmr.msra.gmra.mrb[0].mxu1 %vm80_vm1, %v63_v7 }
   0xe   :  { %170 = vperm.xlu1 %2294, %v135_v8   ;;  %164 = vperm.xlu0 %2293, %v133_v9  }
  0x12   :  { %176 = vperm.xlu1 %2294, %v137_v10   ;;  %173 = vperm.xlu0 %2293, %v136_v11  }
  0x13   :  { %22 = vsyncpa [#allocation6], 0  ;;  %v141_v14 = vld [vmem:[%s3097_s18 + $0x48] sm:$0xff]  ;;  %v140_v15 = vld [vmem:[%s3097_s18 + $0x40] sm:$0xff]  ;;  %vm352_vm2 = vcmask 523264   ;;  %v148_v34 = vlaneseq  ;;  %vm475_vm5 = vcmask 64512  }
  0x14   :  { %v2337_v16 = vld [vmem:[%s3081_s5] sm:$0xff]   ;;  %v143_v17 = vld [vmem:[%s3097_s18 + $0x58] sm:$0xff]  ;;  %v142_v18 = vld [vmem:[%s3097_s18 + $0x50] sm:$0xff]  ;;  %vm125_vm6 = vcmask 257024   ;;  %vm500_vm11 = vcmask 1043456   ;;  %s2418_s1 = smov 4  }
  0x15   :  { %2051 = vmatprep.subr.bf16.mxu1 %v2337_v16  ;;  %v2338_v19 = vld [vmem:[%s3081_s5 + $0x8] sm:$0xff]   ;;  %v144_v21 = vld [vmem:[%s3097_s18 + $0x60] sm:$0xff]  ;;  %v147_v22 = vld [vmem:[%s3097_s18 + $0x78] sm:$0xff]  ;;  %v2623_v35 = vand.u32 127, %v148_v34  ;;  %s3098_s22 = sld [smem:[#allocation8_spill]]  ;;  %s2421_s29 = smov 124  }
  0x16   :  { %182 = vperm.xlu1 %2294, %v139_v12   ;;  %179 = vperm.xlu0 %2293, %v138_v13   ;;  %v145_v20 = vld [vmem:[%s3097_s18 + $0x68] sm:$0xff]  ;;  %v146_v23 = vld [vmem:[%s3097_s18 + $0x70] sm:$0xff]  ;;  %v2340_v25 = vld [vmem:[%s3081_s5 + $0x18] sm:$0xff]   ;;  %s2422_s30 = smov [#allocation5]  }
  0x17   :  { %2052 = vmatpush3.bf16.msra.mxu1 %v2337_v16  ;;  %v2339_v24 = vld [vmem:[%s3081_s5 + $0x10] sm:$0xff]   ;;  %v2341_v26 = vld [vmem:[%s3078_s2] sm:$0xff]   ;;  %v2342_v27 = vld [vmem:[%s3078_s2 + $0x8] sm:$0xff]   ;;  %s1840_s19 = sshll.u32 %s2422_s30, 4  ;;  %s1841_s19 = int_to_ptr.vmem [resolvable:$true] %s1840_s19 }
  0x18   :  { %2053 = vmatprep.subr.bf16.mxu1 %v2338_v19  ;;  %2059 = vmatprep.mubr.msk.bf16.mxu1 %vm352_vm2, %v2341_v26  ;;  %v2343_v28 = vld [vmem:[%s3078_s2 + $0x10] sm:$0xff]   ;;  %v2344_v29 = vld [vmem:[%s3078_s2 + $0x18] sm:$0xff]   ;;  %v2345_v30 = vld [vmem:[%s3078_s2 + $0x20] sm:$0xff]   ;;  %p2394_p1 = scmp.lt.s32.totalorder %s1841_s19, %s1841_s19 }
  0x19   :  { %v2346_v31 = vld [vmem:[%s3078_s2 + $0x28] sm:$0xff]   ;;  %v2347_v32 = vld [vmem:[%s3078_s2 + $0x30] sm:$0xff]   ;;  %v2348_v33 = vld [vmem:[%s3078_s2 + $0x38] sm:$0xff]  }
  0x1a   :  { %188 = vperm.xlu1 %2294, %v141_v14   ;;  %185 = vperm.xlu0 %2293, %v140_v15   ;;  %v617_v52 = vld [vmem:[%s3084_s8] sm:$0xff]  ;;  %v618_v53 = vld [vmem:[%s3084_s8 + $0x8] sm:$0xff]  ;;  %v619_v60 = vld [vmem:[%s3084_s8 + $0x10] sm:$0xff] }
  0x1b   :  { %2054 = vmatpush3.bf16.msra.mxu1 %v2338_v19  ;;  %v2238_v54 = vpack.c.bf16 %v618_v53, %v617_v52  ;;  %v620_v61 = vld [vmem:[%s3084_s8 + $0x18] sm:$0xff]  ;;  %s2416_s8 = smov 96  }
  0x1c   :  { %2055 = vmatprep.subr.bf16.mxu1 %v2339_v24  ;;  %v2242_v3 = vpack.c.bf16 %v620_v61, %v619_v60 }
  0x1e   :  { %194 = vperm.xlu1 %2294, %v143_v17   ;;  %191 = vperm.xlu0 %2293, %v142_v18  }
  0x1f   :  { %2056 = vmatpush3.bf16.msra.mxu1 %v2339_v24 }
  0x20   :  { %2057 = vmatprep.subr.bf16.mxu1 %v2340_v25 }
  0x22   :  { %200 = vperm.xlu1 %2294, %v145_v20   ;;  %197 = vperm.xlu0 %2293, %v144_v21  }
  0x23   :  { %2058 = vmatpush3.bf16.msra.mxu1 %v2340_v25 }
  0x24   :  { %2125 = vmatprep.subr.mxu1 %v2413_v1 }
  0x26   :  { %206 = vperm.xlu1 %2294, %v147_v22   ;;  %203 = vperm.xlu0 %2293, %v146_v23  }
  0x27   :  { %2060 = vmatmul.mubr.msk.bf16.vlgmr.msra.gmra.mrb[4].mxu1 %vm352_vm2, %v2342_v27 }
  0x28   :  { %2063 = vmatprep.mubr.msk.bf16.mxu1 %vm352_vm2, %v2343_v28 }
  0x2f   :  { %2064 = vmatmul.mubr.msk.bf16.gmra.mrb[8].mxu1 %vm352_vm2, %v2344_v29 }
  0x30   :  { %2067 = vmatprep.mubr.msk.bf16.mxu1 %vm352_vm2, %v2345_v30 }
  0x37   :  { %2068 = vmatmul.mubr.msk.bf16.gmra.mrb[12].mxu1 %vm352_vm2, %v2346_v31 }
  0x38   :  { %2071 = vmatprep.mubr.msk.bf16.mxu1 %vm352_vm2, %v2347_v32 }
  0x3f   :  { %2072 = vmatmul.mubr.msk.bf16.gmra.mrb[16].mxu1 %vm352_vm2, %v2348_v33 }
  0x40   :  { %2127 = vmatprep.mubr.msk.f32.mxu1 %vm2414_vm0, %v2413_v1 }
  0x89   :  { %v162_v36 = vpop.permute.xlu0 %161  ;;  %v168_v41 = vpop.permute.xlu1 %167 }
  0x8a   :  { %vm208_vm3 = vcmp.eq.s32.totalorder %v2623_v35, %v162_v36  ;;  %vm210_vm7 = vcmp.eq.s32.totalorder %v2623_v35, %v168_v41 }
  0x8b   :  { %v1853_v37 = vsel %vm208_vm3, 1.0, %v2413_v1  ;;  %v1855_v55 = vsel %vm210_vm7, 1.0, %v2413_v1 }
  0x8d   :  { %v165_v38 = vpop.permute.xlu0 %164  ;;  %v171_v42 = vpop.permute.xlu1 %170 }
  0x8e   :  { %vm209_vm4 = vcmp.eq.s32.totalorder %v2623_v35, %v165_v38  ;;  %vm211_vm8 = vcmp.eq.s32.totalorder %v2623_v35, %v171_v42 }
  0x8f   :  { %v1854_v39 = vsel %vm209_vm4, 1.0, %v2413_v1  ;;  %v1856_v56 = vsel %vm211_vm8, 1.0, %v2413_v1 }
  0x90   :  { %v256_v40 = vpack.c.bf16 %v1854_v39, %v1853_v37  ;;  %v257_v2 = vpack.c.bf16 %v1856_v56, %v1855_v55 }
  0x91   :  { %v177_v43 = vpop.permute.xlu1 %176  ;;  %v174_v44 = vpop.permute.xlu0 %173 }
  0x92   :  { %2077 = vmatprep.mubr.msk.bf16.mxu0 %vm475_vm5, %v256_v40  ;;  %vm213_vm9 = vcmp.eq.s32.totalorder %v2623_v35, %v177_v43  ;;  %vm212_vm10 = vcmp.eq.s32.totalorder %v2623_v35, %v174_v44 }
  0x93   :  { %v1858_v62 = vsel %vm213_vm9, 1.0, %v2413_v1  ;;  %v1857_v63 = vsel %vm212_vm10, 1.0, %v2413_v1  ;;  %vm815_vm9 = vcmask 31744   ;;  %vm127_vm10 = vcmask 293888  }
  0x94   :  { %v258_v4 = vpack.c.bf16 %v1858_v62, %v1857_v63  ;;  %128 = vst.msk [vmem:[#allocation3] sm:$0xff] %vm127_vm10, %v2413_v1 }
  0x95   :  { %v183_v50 = vpop.permute.xlu1 %182  ;;  %v180_v51 = vpop.permute.xlu0 %179 }
  0x96   :  { %vm215_vm12 = vcmp.eq.s32.totalorder %v2623_v35, %v183_v50  ;;  %vm214_vm13 = vcmp.eq.s32.totalorder %v2623_v35, %v180_v51 }
  0x97   :  { %v1860_v7 = vsel %vm215_vm12, 1.0, %v2413_v1  ;;  %v1859_v8 = vsel %vm214_vm13, 1.0, %v2413_v1 }
  0x98   :  { %v259_v11 = vpack.c.bf16 %v1860_v7, %v1859_v8 }
  0x99   :  { %v189_v57 = vpop.permute.xlu1 %188  ;;  %v186_v58 = vpop.permute.xlu0 %185 }
  0x9a   :  { %vm217_vm14 = vcmp.eq.s32.totalorder %v2623_v35, %v189_v57  ;;  %vm216_vm15 = vcmp.eq.s32.totalorder %v2623_v35, %v186_v58 }
  0x9b   :  { %v1862_v9 = vsel %vm217_vm14, 1.0, %v2413_v1  ;;  %v1861_v10 = vsel %vm216_vm15, 1.0, %v2413_v1 }
  0x9c   :  { %v260_v12 = vpack.c.bf16 %v1862_v9, %v1861_v10 }
  0x9d   :  { %v195_v5 = vpop.permute.xlu1 %194  ;;  %v192_v6 = vpop.permute.xlu0 %191 }
  0x9e   :  { %vm219_vm2 = vcmp.eq.s32.totalorder %v2623_v35, %v195_v5  ;;  %vm218_vm3 = vcmp.eq.s32.totalorder %v2623_v35, %v192_v6 }
  0x9f   :  { %v1864_v15 = vsel %vm219_vm2, 1.0, %v2413_v1  ;;  %v1863_v16 = vsel %vm218_vm3, 1.0, %v2413_v1 }
  0xa0   :  { %v261_v21 = vpack.c.bf16 %v1864_v15, %v1863_v16 }
  0xa1   :  { %v201_v13 = vpop.permute.xlu1 %200  ;;  %v198_v14 = vpop.permute.xlu0 %197 }
  0xa2   :  { %vm221_vm4 = vcmp.eq.s32.totalorder %v2623_v35, %v201_v13  ;;  %v858_v13 = vld [vmem:[%s3083_s7] sm:$0xf] }
  0xa3   :  { %v1866_v17 = vsel %vm221_vm4, 1.0, %v2413_v1  ;;  %2126 = vmatpush3.msk.msra.mxu1 %vm500_vm11, %v858_v13 }
  0xa5   :  { %v207_v19 = vpop.permute.xlu1 %206  ;;  %v204_v20 = vpop.permute.xlu0 %203 }
  0xa6   :  { %vm223_vm7 = vcmp.eq.s32.totalorder %v2623_v35, %v207_v19  ;;  %vm222_vm8 = vcmp.eq.s32.totalorder %v2623_v35, %v204_v20 }
  0xa7   :  { %v1868_v23 = vsel %vm223_vm7, 1.0, %v2413_v1  ;;  %v1867_v24 = vsel %vm222_vm8, 1.0, %v2413_v1 }
  0xa8   :  { %v263_v25 = vpack.c.bf16 %v1868_v23, %v1867_v24 }
  0xdf   :  { %v118_v45 = vpop.f32.mrb[0].mxu1 }
  0xe0   :  { %v124_v46 = vpack.c.bf16 %v118_v45, %v118_v45  ;;  %v2049_v47 = vpop.f32.mrb[1].mxu1 }
  0xe1   :  { %v121_v48 = vpop.f32.mrb[2].mxu1 }
  0xe2   :  { %126 = vst.msk [vmem:[#allocation2] sm:$0xf] %vm125_vm6, %v124_v46  ;;  %v2050_v49 = vpop.f32.mrb[3].mxu1  ;;  %vm220_vm6 = vcmp.eq.s32.totalorder %v2623_v35, %v198_v14  ;;  %v2706_v14 = vld [vmem:[%s3083_s7] sm:$0xf] }
  0xe3   :  { %v1865_v18 = vsel %vm220_vm6, 1.0, %v2413_v1  ;;  %2130 = vmatprep.subr.msk.mxu1 %vm500_vm11, %v2706_v14 }
  0xe4   :  { %v262_v22 = vpack.c.bf16 %v1866_v17, %v1865_v18 }
  0xe9   :  { %v474_v59 = vld [vmem:[#allocation2] sm:$0xf] }
  0xea   :  { %2282 = vmatprep.subr.msk.bf16.mxu0 %vm500_vm11, %v474_v59  ;;  %v502_v0 = vsel %vm500_vm11, %v474_v59, 0 }
  0xeb   :  { %2076 = vmatpush3.bf16.msra.mxu0 %v502_v0 }
  0xec   :  { %2239 = vmatprep.subr.bf16.mxu0 %v2238_v54 }
  0xee   :  { %2078 = vmatmul.mubr.msk.bf16.vlgmr.msra.gmra.mrb[0].mxu0 %vm475_vm5, %v257_v2 }
  0xef   :  { %2081 = vmatprep.mubr.msk.bf16.mxu0 %vm475_vm5, %v258_v4  ;;  %2241 = vmatpush3.bf16.msra.mxu0 %v2238_v54 }
  0xf0   :  { %2243 = vmatprep.subr.bf16.mxu0 %v2242_v3 }
  0xf3   :  { %2245 = vmatpush3.bf16.msra.mxu0 %v2242_v3 }
  0xf4   :  { %2156 = vmatprep.subr.bf16.mxu0 %v2413_v1 }
  0xf6   :  { %2082 = vmatmul.mubr.msk.bf16.gmra.mrb[4].mxu0 %vm475_vm5, %v259_v11 }
  0xf7   :  { %2085 = vmatprep.mubr.msk.bf16.mxu0 %vm475_vm5, %v260_v12  ;;  %v2417_v12 = vmov -1e+30  }
  0xfa   :  { %v2061_v26 = vpop.f32.mrb[4].mxu1 }
  0xfb   :  { %v411_v27 = vpop.f32.mrb[5].mxu1 }
  0xfc   :  { %v2062_v28 = vpop.f32.mrb[6].mxu1  ;;  %1209 = vrot.lane.b32.xlu0 %v411_v27, %s2416_s8 }
  0xfd   :  { %v414_v29 = vpop.f32.mrb[7].mxu1 }
  0xfe   :  { %2086 = vmatmul.mubr.msk.bf16.gmra.mrb[8].mxu0 %vm475_vm5, %v261_v21  ;;  %1211 = vrot.lane.b32.xlu1 %v414_v29, %s2416_s8 }
  0xff   :  { %2089 = vmatprep.mubr.msk.bf16.mxu0 %vm475_vm5, %v262_v22 }
 0x100   :  { %1213 = vrot.lane.b32.xlu0 %v2061_v26, %s2416_s8 }
 0x102   :  { %1215 = vrot.lane.b32.xlu1 %v2062_v28, %s2416_s8  ;;  %v2065_v30 = vpop.f32.mrb[8].mxu1 }
 0x103   :  { %v427_v31 = vpop.f32.mrb[9].mxu1 }
 0x104   :  { %v2066_v32 = vpop.f32.mrb[10].mxu1  ;;  %1217 = vrot.lane.b32.xlu0 %v427_v31, %s2416_s8 }
 0x105   :  { %v430_v33 = vpop.f32.mrb[11].mxu1 }
 0x106   :  { %2090 = vmatmul.mubr.msk.bf16.gmra.mrb[12].mxu0 %vm475_vm5, %v263_v25  ;;  %1219 = vrot.lane.b32.xlu1 %v430_v33, %s2416_s8  ;;  %vm129_vm5 = vcmask 24576  }
 0x107   :  { %130 = vst.msk [vmem:[#allocation4] sm:$0x1] %vm129_vm5, %v2417_v12 }
 0x108   :  { %1221 = vrot.lane.b32.xlu0 %v2065_v30, %s2416_s8 }
 0x10a   :  { %1223 = vrot.lane.b32.xlu1 %v2066_v32, %s2416_s8  ;;  %v2069_v35 = vpop.f32.mrb[12].mxu1 }
 0x10b   :  { %v443_v36 = vpop.f32.mrb[13].mxu1 }
 0x10c   :  { %v2070_v37 = vpop.f32.mrb[14].mxu1  ;;  %1225 = vrot.lane.b32.xlu0 %v443_v36, %s2416_s8 }
 0x10d   :  { %v446_v38 = vpop.f32.mrb[15].mxu1 }
 0x10e   :  { %1227 = vrot.lane.b32.xlu1 %v446_v38, %s2416_s8 }
 0x110   :  { %1229 = vrot.lane.b32.xlu0 %v2069_v35, %s2416_s8 }
 0x112   :  { %1231 = vrot.lane.b32.xlu1 %v2070_v37, %s2416_s8  ;;  %v2073_v39 = vpop.f32.mrb[16].mxu1 }
 0x113   :  { %v459_v40 = vpop.f32.mrb[17].mxu1 }
 0x114   :  { %v2074_v41 = vpop.f32.mrb[18].mxu1  ;;  %1233 = vrot.lane.b32.xlu0 %v459_v40, %s2416_s8 }
 0x115   :  { %v462_v42 = vpop.f32.mrb[19].mxu1 }
 0x116   :  { %1235 = vrot.lane.b32.xlu1 %v462_v42, %s2416_s8 }
 0x118   :  { %1237 = vrot.lane.b32.xlu0 %v2073_v39, %s2416_s8 }
 0x11a   :  { %1239 = vrot.lane.b32.xlu1 %v2074_v41, %s2416_s8 }
 0x1c1   :  { %v2079_v43 = vpop.f32.mrb[0].mxu0 }
 0x1c2   :  { %v603_v44 = vmul.f32 %v2079_v43, %v2061_v26  ;;  %v538_v45 = vpop.f32.mrb[1].mxu0 }
 0x1c3   :  { %v601_v46 = vmul.f32 %v538_v45, %v411_v27  ;;  %v2080_v47 = vpop.f32.mrb[2].mxu0 }
 0x1c4   :  { %v604_v48 = vmul.f32 %v2080_v47, %v2062_v28  ;;  %v541_v49 = vpop.f32.mrb[3].mxu0 }
 0x1c5   :  { %v602_v50 = vmul.f32 %v541_v49, %v414_v29  ;;  %2101 = vmatprep.mubr.msk.f32.mxu0 %vm80_vm1, %v601_v46 }
 0x1c7   :  { %2102 = vmatmul.mubr.msk.f32.vlgmr.msra.gmra.mrb[16].mxu0 %vm80_vm1, %v602_v50 }
 0x1c8   :  { %2104 = vmatprep.mubr.msk.f32.mxu0 %vm80_vm1, %v603_v44 }
 0x1c9   :  { %v2083_v51 = vpop.f32.mrb[4].mxu0 }
 0x1ca   :  { %v607_v52 = vmul.f32 %v2083_v51, %v2065_v30  ;;  %v554_v53 = vpop.f32.mrb[5].mxu0 }
 0x1cb   :  { %v605_v54 = vmul.f32 %v554_v53, %v427_v31  ;;  %v2084_v55 = vpop.f32.mrb[6].mxu0  ;;  %2105 = vmatmul.mubr.msk.f32.gmra.mrb[18].mxu0 %vm80_vm1, %v604_v48 }
 0x1cc   :  { %v608_v56 = vmul.f32 %v2084_v55, %v2066_v32  ;;  %v557_v57 = vpop.f32.mrb[7].mxu0 }
 0x1cd   :  { %v606_v58 = vmul.f32 %v557_v57, %v430_v33  ;;  %2107 = vmatprep.mubr.msk.f32.mxu0 %vm80_vm1, %v605_v54 }
 0x1cf   :  { %2108 = vmatmul.mubr.msk.f32.gmra.mrb[20].mxu0 %vm80_vm1, %v606_v58 }
 0x1d0   :  { %2110 = vmatprep.mubr.msk.f32.mxu0 %vm80_vm1, %v607_v52 }
 0x1d1   :  { %v2087_v59 = vpop.f32.mrb[8].mxu0 }
 0x1d2   :  { %v611_v60 = vmul.f32 %v2087_v59, %v2069_v35  ;;  %v570_v61 = vpop.f32.mrb[9].mxu0 }
 0x1d3   :  { %v609_v62 = vmul.f32 %v570_v61, %v443_v36  ;;  %v2088_v63 = vpop.f32.mrb[10].mxu0  ;;  %2111 = vmatmul.mubr.msk.f32.gmra.mrb[22].mxu0 %vm80_vm1, %v608_v56 }
 0x1d4   :  { %v612_v0 = vmul.f32 %v2088_v63, %v2070_v37  ;;  %v573_v2 = vpop.f32.mrb[11].mxu0 }
 0x1d5   :  { %v610_v3 = vmul.f32 %v573_v2, %v446_v38  ;;  %2113 = vmatprep.mubr.msk.f32.mxu0 %vm80_vm1, %v609_v62 }
 0x1d7   :  { %2114 = vmatmul.mubr.msk.f32.gmra.mrb[24].mxu0 %vm80_vm1, %v610_v3  ;;  %v2775_v3 = vshrl.u32 %v148_v34, 7 }
 0x1d8   :  { %2116 = vmatprep.mubr.msk.f32.mxu0 %vm80_vm1, %v611_v60 }
 0x1d9   :  { %v2091_v4 = vpop.f32.mrb[12].mxu0 }
 0x1da   :  { %v615_v5 = vmul.f32 %v2091_v4, %v2073_v39  ;;  %v586_v6 = vpop.f32.mrb[13].mxu0 }
 0x1db   :  { %v613_v7 = vmul.f32 %v586_v6, %v459_v40  ;;  %v2092_v8 = vpop.f32.mrb[14].mxu0  ;;  %2117 = vmatmul.mubr.msk.f32.gmra.mrb[26].mxu0 %vm80_vm1, %v612_v0  ;;  %v853_v6 = vld [vmem:[#allocation4] sm:$0x1] }
 0x1dc   :  { %v616_v9 = vmul.f32 %v2092_v8, %v2074_v41  ;;  %v589_v10 = vpop.f32.mrb[15].mxu0  ;;  %v2778_v8 = vsub.s32 0, %v2775_v3 }
 0x1dd   :  { %v614_v11 = vmul.f32 %v589_v10, %v462_v42  ;;  %2119 = vmatprep.mubr.msk.f32.mxu0 %vm80_vm1, %v613_v7 }
 0x1df   :  { %2120 = vmatmul.mubr.msk.f32.gmra.mrb[28].mxu0 %vm80_vm1, %v614_v11 }
 0x1e0   :  { %2122 = vmatprep.mubr.msk.f32.mxu0 %vm80_vm1, %v615_v5 }
 0x1e3   :  { %2123 = vmatmul.mubr.msk.f32.gmra.mrb[30].mxu0 %vm80_vm1, %v616_v9 }
 0x1e4   :  { %2172 = vmatprep.mubr.msk.bf16.mxu0 %vm2414_vm0, %v2413_v1 }
 0x29a   :  { %v2710_v15 = vpop.f32.mrb[16].mxu0 }
 0x29b   :  { %v2712_v16 = vpop.f32.mrb[17].mxu0  ;;  %v817_v20 = vsel %vm815_vm9, %v2710_v15, -inf }
 0x29c   :  { %v816_v23 = vsel %vm815_vm9, %v2712_v16, -inf }
 0x29e   :  { %v2714_v17 = vpop.f32.mrb[18].mxu0 }
 0x29f   :  { %v2716_v18 = vpop.f32.mrb[19].mxu0  ;;  %v819_v28 = vsel %vm815_vm9, %v2714_v17, -inf }
 0x2a0   :  { %v818_v31 = vsel %vm815_vm9, %v2716_v18, -inf }
 0x2a2   :  { %v2718_v19 = vpop.f32.mrb[20].mxu0 }
 0x2a3   :  { %v822_v21 = vsel %vm815_vm9, %v2718_v19, -inf  ;;  %v2724_v22 = vpop.f32.mrb[21].mxu0 }
 0x2a4   :  { %v823_v24 = vmax.f32 %v817_v20, %v822_v21  ;;  %v820_v25 = vsel %vm815_vm9, %v2724_v22, -inf }
 0x2a5   :  { %v821_v26 = vmax.f32 %v816_v23, %v820_v25 }
 0x2a6   :  { %v2730_v27 = vpop.f32.mrb[22].mxu0 }
 0x2a7   :  { %v826_v29 = vsel %vm815_vm9, %v2730_v27, -inf  ;;  %v2736_v30 = vpop.f32.mrb[23].mxu0 }
 0x2a8   :  { %v827_v32 = vmax.f32 %v819_v28, %v826_v29  ;;  %v824_v33 = vsel %vm815_vm9, %v2736_v30, -inf }
 0x2a9   :  { %v825_v35 = vmax.f32 %v818_v31, %v824_v33 }
 0x2aa   :  { %v2742_v36 = vpop.f32.mrb[24].mxu0 }
 0x2ab   :  { %v830_v37 = vsel %vm815_vm9, %v2742_v36, -inf  ;;  %v2746_v38 = vpop.f32.mrb[25].mxu0 }
 0x2ac   :  { %v831_v39 = vmax.f32 %v823_v24, %v830_v37  ;;  %v828_v40 = vsel %vm815_vm9, %v2746_v38, -inf }
 0x2ad   :  { %v829_v41 = vmax.f32 %v821_v26, %v828_v40 }
 0x2ae   :  { %v2750_v42 = vpop.f32.mrb[26].mxu0 }
 0x2af   :  { %v834_v43 = vsel %vm815_vm9, %v2750_v42, -inf  ;;  %v2754_v44 = vpop.f32.mrb[27].mxu0 }
 0x2b0   :  { %v835_v45 = vmax.f32 %v827_v32, %v834_v43  ;;  %v832_v46 = vsel %vm815_vm9, %v2754_v44, -inf }
 0x2b1   :  { %v833_v47 = vmax.f32 %v825_v35, %v832_v46 }
 0x2b2   :  { %v2758_v48 = vpop.f32.mrb[28].mxu0 }
 0x2b3   :  { %v838_v49 = vsel %vm815_vm9, %v2758_v48, -inf  ;;  %v2762_v50 = vpop.f32.mrb[29].mxu0 }
 0x2b4   :  { %v839_v51 = vmax.f32 %v831_v39, %v838_v49  ;;  %v836_v52 = vsel %vm815_vm9, %v2762_v50, -inf }
 0x2b5   :  { %v837_v53 = vmax.f32 %v829_v41, %v836_v52 }
 0x2b6   :  { %v2766_v54 = vpop.f32.mrb[30].mxu0 }
 0x2b7   :  { %v844_v55 = vmax.f32 %v837_v53, %v839_v51  ;;  %v842_v56 = vsel %vm815_vm9, %v2766_v54, -inf  ;;  %v2770_v57 = vpop.f32.mrb[31].mxu0 }
 0x2b8   :  { %v843_v58 = vmax.f32 %v835_v45, %v842_v56  ;;  %v840_v59 = vsel %vm815_vm9, %v2770_v57, -inf }
 0x2b9   :  { %v841_v60 = vmax.f32 %v833_v47, %v840_v59 }
 0x2bb   :  { %v845_v61 = vmax.f32 %v841_v60, %v843_v58 }
 0x2bd   :  { %v846_v62 = vmax.f32 %v844_v55, %v845_v61 }
 0x2bf   :  { %v847_v63 = vrot.slane %v846_v62, 4 }
 0x2c1   :  { %v848_v0 = vmax.f32 %v846_v62, %v847_v63  ;;  %v1212_v62 = vpop.permute.xlu1 %1211  ;;  %v1210_v63 = vpop.permute.xlu0 %1209 }
 0x2c3   :  { %v849_v2 = vrot.slane %v848_v0, 2 }
 0x2c5   :  { %v850_v4 = vmax.f32 %v848_v0, %v849_v2  ;;  %v1216_v0 = vpop.permute.xlu1 %1215  ;;  %v1214_v2 = vpop.permute.xlu0 %1213 }
 0x2c7   :  { %v851_v5 = vrot.slane %v850_v4, 1 }
 0x2c9   :  { %v852_v7 = vmax.f32 %v850_v4, %v851_v5 }
 0x2cb   :  { %v854_v9 = vmax.f32 %v853_v6, %v852_v7  ;;  %v1218_v7 = vpop.permute.xlu0 %1217 }
 0x2cd   :  { %v855_v10 = vsub.f32 %v853_v6, %v854_v9  ;;  %941 = vst.msk [vmem:[#allocation4] sm:$0x1] %vm129_vm5, %v854_v9  ;;  %v2782_v11 = vrot.slane %v854_v9, %v2778_v8  ;;  %v1220_v6 = vpop.permute.xlu1 %1219 }
 0x2cf   :  { %v856_v12 = vmul.f32 1.442695, %v855_v10  ;;  %v962_v13 = vsub.f32 %v2770_v57, %v2782_v11  ;;  %v948_v34 = vsub.f32 %v2712_v16, %v2782_v11  ;;  %v949_v20 = vsub.f32 %v2710_v15, %v2782_v11 }
 0x2d0   :  { %v950_v21 = vsub.f32 %v2716_v18, %v2782_v11  ;;  %v951_v23 = vsub.f32 %v2714_v17, %v2782_v11  ;;  %v952_v24 = vsub.f32 %v2724_v22, %v2782_v11  ;;  %v953_v25 = vsub.f32 %v2718_v19, %v2782_v11 }
 0x2d1   :  { %2349 = vpow2.f32 %v856_v12  ;;  %v964_v26 = vmul.f32 1.442695, %v948_v34  ;;  %v966_v28 = vmul.f32 1.442695, %v949_v20  ;;  %v954_v16 = vsub.f32 %v2736_v30, %v2782_v11 }
 0x2d2   :  { %v968_v29 = vmul.f32 1.442695, %v950_v21  ;;  %v955_v15 = vsub.f32 %v2730_v27, %v2782_v11  ;;  %v956_v18 = vsub.f32 %v2746_v38, %v2782_v11  ;;  %v957_v17 = vsub.f32 %v2742_v36, %v2782_v11  ;;  %v1222_v21 = vpop.permute.xlu0 %1221 }
 0x2d3   :  { %2351 = vpow2.f32 %v964_v26  ;;  %v958_v19 = vsub.f32 %v2754_v44, %v2782_v11  ;;  %v970_v22 = vmul.f32 1.442695, %v951_v23  ;;  %v959_v31 = vsub.f32 %v2750_v42, %v2782_v11 }
 0x2d4   :  { %2353 = vpow2.f32 %v966_v28  ;;  %v972_v30 = vmul.f32 1.442695, %v952_v24  ;;  %v960_v27 = vsub.f32 %v2762_v50, %v2782_v11  ;;  %v961_v32 = vsub.f32 %v2758_v48, %v2782_v11 }
 0x2d5   :  { %2355 = vpow2.f32 %v968_v29  ;;  %v963_v33 = vsub.f32 %v2766_v54, %v2782_v11  ;;  %v974_v35 = vmul.f32 1.442695, %v953_v25  ;;  %v976_v36 = vmul.f32 1.442695, %v954_v16 }
 0x2d6   :  { %2357 = vpow2.f32 %v970_v22  ;;  %v978_v38 = vmul.f32 1.442695, %v955_v15  ;;  %v980_v40 = vmul.f32 1.442695, %v956_v18  ;;  %v984_v43 = vmul.f32 1.442695, %v958_v19 }
 0x2d7   :  { %2359 = vpow2.f32 %v972_v30  ;;  %v986_v46 = vmul.f32 1.442695, %v959_v31  ;;  %v988_v47 = vmul.f32 1.442695, %v960_v27  ;;  %v990_v50 = vmul.f32 1.442695, %v961_v32 }
 0x2d8   :  { %2361 = vpow2.f32 %v974_v35  ;;  %v992_v51 = vmul.f32 1.442695, %v962_v13  ;;  %v994_v54 = vmul.f32 1.442695, %v963_v33  ;;  %v1224_v13 = vpop.permute.xlu1 %1223 }
 0x2d9   :  { %2363 = vpow2.f32 %v976_v36 }
 0x2da   :  { %2365 = vpow2.f32 %v978_v38 }
 0x2db   :  { %v2816_v37 = vpop.eup %2349  ;;  %2367 = vpow2.f32 %v980_v40 }
 0x2dc   :  { %2128 = vmatmul.mubr.msk.f32.vlgmr.msra.gmra.mrb[20].mxu1 %vm815_vm9, %v2816_v37  ;;  %v1228_v15 = vpop.permute.xlu1 %1227 }
 0x2dd   :  { %2131 = vmatpush3.msk.msra.mxu1 %vm500_vm11, %v2706_v14  ;;  %v2822_v39 = vpop.eup %2351  ;;  %v982_v14 = vmul.f32 1.442695, %v957_v17  ;;  %v1226_v17 = vpop.permute.xlu0 %1225 }
 0x2de   :  { %2176 = vmatprep.subr.mxu1 %v2413_v1  ;;  %v2825_v41 = vpop.eup %2353  ;;  %2132 = vmatprep.mubr.msk.f32.mxu1 %vm815_vm9, %v2822_v39 }
 0x2df   :  { %v2829_v42 = vpop.eup %2355  ;;  %2369 = vpow2.f32 %v982_v14 }
 0x2e0   :  { %2133 = vmatmul.mubr.msk.f32.vlgmr.msra.gmra.mrb[22].mxu1 %vm815_vm9, %v2825_v41  ;;  %v2835_v44 = vpop.eup %2357  ;;  %2371 = vpow2.f32 %v984_v43  ;;  %v1232_v32 = vpop.permute.xlu1 %1231 }
 0x2e1   :  { %2135 = vmatprep.mubr.msk.f32.mxu1 %vm815_vm9, %v2829_v42  ;;  %v2837_v45 = vpop.eup %2359  ;;  %2373 = vpow2.f32 %v986_v46  ;;  %v1230_v36 = vpop.permute.xlu0 %1229 }
 0x2e2   :  { %v2843_v48 = vpop.eup %2361  ;;  %2375 = vpow2.f32 %v988_v47 }
 0x2e3   :  { %v2845_v49 = vpop.eup %2363  ;;  %2377 = vpow2.f32 %v990_v50 }
 0x2e4   :  { %2136 = vmatmul.mubr.msk.f32.gmra.mrb[24].mxu1 %vm815_vm9, %v2835_v44  ;;  %v2851_v52 = vpop.eup %2365  ;;  %2379 = vpow2.f32 %v992_v51  ;;  %v1236_v51 = vpop.permute.xlu1 %1235 }
 0x2e5   :  { %2138 = vmatprep.mubr.msk.f32.mxu1 %vm815_vm9, %v2837_v45  ;;  %v2853_v53 = vpop.eup %2367  ;;  %2381 = vpow2.f32 %v994_v54 }
 0x2e8   :  { %2139 = vmatmul.mubr.msk.f32.gmra.mrb[26].mxu1 %vm815_vm9, %v2843_v48 }
 0x2e9   :  { %2141 = vmatprep.mubr.msk.f32.mxu1 %vm815_vm9, %v2845_v49  ;;  %v2859_v55 = vpop.eup %2369 }
 0x2ea   :  { %v2861_v56 = vpop.eup %2371 }
 0x2eb   :  { %v2867_v57 = vpop.eup %2373 }
 0x2ec   :  { %2142 = vmatmul.mubr.msk.f32.gmra.mrb[28].mxu1 %vm815_vm9, %v2851_v52  ;;  %v2869_v58 = vpop.eup %2375 }
 0x2ed   :  { %2144 = vmatprep.mubr.msk.f32.mxu1 %vm815_vm9, %v2853_v53  ;;  %v2875_v59 = vpop.eup %2377 }
 0x2ee   :  { %v2877_v60 = vpop.eup %2379 }
 0x2ef   :  { %v2883_v61 = vpop.eup %2381 }
 0x2f0   :  { %2145 = vmatmul.mubr.msk.f32.gmra.mrb[30].mxu1 %vm815_vm9, %v2859_v55 }
 0x2f1   :  { %2147 = vmatprep.mubr.msk.f32.mxu1 %vm815_vm9, %v2861_v56 }
 0x2f4   :  { %2148 = vmatmul.mubr.msk.f32.gmra.mrb[32].mxu1 %vm815_vm9, %v2867_v57 }
 0x2f5   :  { %2150 = vmatprep.mubr.msk.f32.mxu1 %vm815_vm9, %v2869_v58 }
 0x2f8   :  { %2151 = vmatmul.mubr.msk.f32.gmra.mrb[34].mxu1 %vm815_vm9, %v2875_v59 }
 0x2f9   :  { %2153 = vmatprep.mubr.msk.f32.mxu1 %vm815_vm9, %v2877_v60 }
 0x2fc   :  { %2154 = vmatmul.mubr.msk.f32.gmra.mrb[36].mxu1 %vm815_vm9, %v2883_v61 }
 0x2fd   :  { %2178 = vmatprep.mubr.msk.f32.mxu1 %vm2414_vm0, %v2413_v1 }
 0x3af   :  { %v2889_v4 = vpop.f32.mrb[20].mxu1 }
 0x3b0   :  { %v2129_v5 = vpop.f32.mrb[21].mxu1 }
 0x3b3   :  { %v2134_v9 = vpop.f32.mrb[22].mxu1 }
 0x3b4   :  { %v1258_v10 = vmul.f32 %v2134_v9, %v1212_v62  ;;  %v1114_v11 = vpop.f32.mrb[23].mxu1  ;;  %v1234_v62 = vpop.permute.xlu0 %1233 }
 0x3b5   :  { %v1257_v12 = vmul.f32 %v1210_v63, %v1114_v11 }
 0x3b7   :  { %v2295_v34 = vpack.i.bf16 %v1258_v10, %v1257_v12  ;;  %v2137_v20 = vpop.f32.mrb[24].mxu1 }
 0x3b8   :  { %v1260_v23 = vmul.f32 %v2137_v20, %v1216_v0  ;;  %v1124_v24 = vpop.f32.mrb[25].mxu1  ;;  %v1238_v11 = vpop.permute.xlu0 %1237 }
 0x3b9   :  { %v1259_v25 = vmul.f32 %v1214_v2, %v1124_v24  ;;  %2296 = vrot.lane.b32.xlu0 %v2295_v34, %s2418_s1  ;;  %v1416_v34 = vld [vmem:[%s3083_s7] sm:$0xf] }
 0x3ba   :  { %2177 = vmatpush3.msk.msra.mxu1 %vm500_vm11, %v1416_v34 }
 0x3bb   :  { %v2300_v26 = vpack.i.bf16 %v1260_v23, %v1259_v25  ;;  %v2140_v28 = vpop.f32.mrb[26].mxu1 }
 0x3bc   :  { %v1262_v29 = vmul.f32 %v2140_v28, %v1220_v6  ;;  %v1134_v16 = vpop.f32.mrb[27].mxu1 }
 0x3bd   :  { %v1261_v18 = vmul.f32 %v1218_v7, %v1134_v16  ;;  %2301 = vrot.lane.b32.xlu1 %v2300_v26, %s2418_s1  ;;  %v1240_v7 = vpop.permute.xlu1 %1239 }
 0x3bf   :  { %v2305_v19 = vpack.i.bf16 %v1262_v29, %v1261_v18  ;;  %v2143_v22 = vpop.f32.mrb[28].mxu1 }
 0x3c0   :  { %v1264_v31 = vmul.f32 %v2143_v22, %v1224_v13  ;;  %v1144_v30 = vpop.f32.mrb[29].mxu1 }
 0x3c1   :  { %v1263_v27 = vmul.f32 %v1222_v21, %v1144_v30  ;;  %2306 = vrot.lane.b32.xlu0 %v2305_v19, %s2418_s1 }
 0x3c3   :  { %v2310_v33 = vpack.i.bf16 %v1264_v31, %v1263_v27  ;;  %v2146_v35 = vpop.f32.mrb[30].mxu1 }
 0x3c4   :  { %v1266_v38 = vmul.f32 %v2146_v35, %v1228_v15  ;;  %v1154_v40 = vpop.f32.mrb[31].mxu1 }
 0x3c5   :  { %v1265_v14 = vmul.f32 %v1226_v17, %v1154_v40  ;;  %2311 = vrot.lane.b32.xlu1 %v2310_v33, %s2418_s1 }
 0x3c7   :  { %v2315_v43 = vpack.i.bf16 %v1266_v38, %v1265_v14  ;;  %v2149_v46 = vpop.f32.mrb[32].mxu1 }
 0x3c8   :  { %v1268_v47 = vmul.f32 %v2149_v46, %v1232_v32  ;;  %v1164_v50 = vpop.f32.mrb[33].mxu1 }
 0x3c9   :  { %v1267_v54 = vmul.f32 %v1230_v36, %v1164_v50  ;;  %2316 = vrot.lane.b32.xlu0 %v2315_v43, %s2418_s1 }
 0x3cb   :  { %v2320_v63 = vpack.i.bf16 %v1268_v47, %v1267_v54  ;;  %v2152_v0 = vpop.f32.mrb[34].mxu1 }
 0x3cc   :  { %v1270_v2 = vmul.f32 %v2152_v0, %v1236_v51  ;;  %v1174_v5 = vpop.f32.mrb[35].mxu1 }
 0x3cd   :  { %v1269_v6 = vmul.f32 %v1234_v62, %v1174_v5  ;;  %2321 = vrot.lane.b32.xlu1 %v2320_v63, %s2418_s1 }
 0x3cf   :  { %v2325_v9 = vpack.i.bf16 %v1270_v2, %v1269_v6  ;;  %v2155_v10 = vpop.f32.mrb[36].mxu1 }
 0x3d0   :  { %v1272_v12 = vmul.f32 %v2155_v10, %v1240_v7  ;;  %v1184_v13 = vpop.f32.mrb[37].mxu1  ;;  %v2419_v7 = vmov 1.0|1.0  }
 0x3d1   :  { %v1271_v20 = vmul.f32 %v1238_v11, %v1184_v13  ;;  %2326 = vrot.lane.b32.xlu0 %v2325_v9, %s2418_s1  ;;  %v1361_v11 = vld [vmem:[#allocation3] sm:$0xff] }
 0x3d3   :  { %v2330_v21 = vpack.i.bf16 %v1272_v12, %v1271_v20 }
 0x3d5   :  { %936 = vrot.lane.b32.xlu0 %v2889_v4, %s2418_s1  ;;  %2331 = vrot.lane.b32.xlu1 %v2330_v21, %s2418_s1 }
 0x42b   :  { %v2297_v23 = vpop.permute.xlu0 %2296 }
 0x42c   :  { %v2299_v24 = vunpack.i.h.bf16 %v2297_v23  ;;  %v2298_v25 = vunpack.i.l.bf16 %v2297_v23 }
 0x42e   :  { %v1338_v26 = vsel %vm815_vm9, %v2825_v41, %v2299_v24  ;;  %v1337_v28 = vsel %vm815_vm9, %v2822_v39, %v2298_v25  ;;  %v1499_v25 = vld [vmem:[%s3082_s6 + $0x8] sm:$0xff] }
 0x42f   :  { %v1353_v29 = vpack.c.bf16 %v1338_v26, %v1337_v28  ;;  %v2302_v16 = vpop.permute.xlu1 %2301  ;;  %v1500_v26 = vld [vmem:[%s3082_s6 + $0x10] sm:$0xff]  ;;  %v2420_v28 = vmov 0.0|0.0  }
 0x430   :  { %v2304_v15 = vunpack.i.h.bf16 %v2302_v16  ;;  %v2303_v18 = vunpack.i.l.bf16 %v2302_v16  ;;  %v1501_v16 = vld [vmem:[%s3082_s6 + $0x18] sm:$0xff]  ;;  %2252 = vmatprep.subr.bf16.mxu1 %v2420_v28 }
 0x431   :  { %2157 = vmatpush3.bf16.msra.mxu0 %v1353_v29 }
 0x432   :  { %v1340_v17 = vsel %vm815_vm9, %v2835_v44, %v2304_v15  ;;  %v1339_v4 = vsel %vm815_vm9, %v2829_v42, %v2303_v18  ;;  %2158 = vmatprep.subr.bf16.mxu0 %v2413_v1  ;;  %v2250_v15 = vpack.c.bf16 %v1501_v16, %v1500_v26 }
 0x433   :  { %v1354_v19 = vpack.c.bf16 %v1340_v17, %v1339_v4  ;;  %v2307_v22 = vpop.permute.xlu0 %2306 }
 0x434   :  { %v2309_v31 = vunpack.i.h.bf16 %v2307_v22  ;;  %v2308_v41 = vunpack.i.l.bf16 %v2307_v22 }
 0x435   :  { %2159 = vmatpush3.bf16.msra.mxu0 %v1354_v19 }
 0x436   :  { %v1342_v39 = vsel %vm815_vm9, %v2843_v48, %v2309_v31  ;;  %v1341_v30 = vsel %vm815_vm9, %v2837_v45, %v2308_v41  ;;  %2160 = vmatprep.subr.bf16.mxu0 %v2413_v1  ;;  %v1617_v31 = vld [vmem:[%s3085_s9] sm:$0xff]  ;;  %v1618_v41 = vld [vmem:[%s3085_s9 + $0x8] sm:$0xff] }
 0x437   :  { %v1355_v27 = vpack.c.bf16 %v1342_v39, %v1341_v30  ;;  %v2312_v44 = vpop.permute.xlu1 %2311  ;;  %v1619_v39 = vld [vmem:[%s3085_s9 + $0x10] sm:$0xff]  ;;  %v2253_v30 = vpack.c.bf16 %v1618_v41, %v1617_v31 }
 0x438   :  { %v2314_v32 = vunpack.i.h.bf16 %v2312_v44  ;;  %v2313_v33 = vunpack.i.l.bf16 %v2312_v44  ;;  %v1703_v44 = vld [vmem:[%s3087_s11 + $0x8] sm:$0xff] }
 0x439   :  { %2161 = vmatpush3.bf16.msra.mxu0 %v1355_v27  ;;  %v1620_v27 = vld [vmem:[%s3085_s9 + $0x18] sm:$0xff] }
 0x43a   :  { %v1344_v42 = vsel %vm815_vm9, %v2851_v52, %v2314_v32  ;;  %v1343_v35 = vsel %vm815_vm9, %v2845_v49, %v2313_v33  ;;  %2162 = vmatprep.subr.bf16.mxu0 %v2413_v1  ;;  %v1704_v32 = vld [vmem:[%s3087_s11 + $0x10] sm:$0xff]  ;;  %v2256_v33 = vpack.c.bf16 %v1620_v27, %v1619_v39  ;;  %v1940_v39 = vld [vmem:[%s3088_s12] ss:$0 sm:$0xff] }
 0x43b   :  { %v1356_v36 = vpack.c.bf16 %v1344_v42, %v1343_v35  ;;  %v2317_v48 = vpop.permute.xlu0 %2316  ;;  %v1705_v35 = vld [vmem:[%s3087_s11 + $0x18] sm:$0xff] }
 0x43c   :  { %v2319_v38 = vunpack.i.h.bf16 %v2317_v48  ;;  %v2318_v40 = vunpack.i.l.bf16 %v2317_v48  ;;  %v1706_v48 = vld [vmem:[%s3087_s11 + $0x20] sm:$0xff] }
 0x43d   :  { %2163 = vmatpush3.bf16.msra.mxu0 %v1356_v36  ;;  %v2262_v36 = vpack.c.bf16 %v1705_v35, %v1704_v32 }
 0x43e   :  { %v1346_v45 = vsel %vm815_vm9, %v2859_v55, %v2319_v38  ;;  %v1345_v14 = vsel %vm815_vm9, %v2853_v53, %v2318_v40  ;;  %2164 = vmatprep.subr.bf16.mxu0 %v2413_v1  ;;  %v1707_v38 = vld [vmem:[%s3087_s11 + $0x28] sm:$0xff] }
 0x43f   :  { %v1357_v43 = vpack.c.bf16 %v1346_v45, %v1345_v14  ;;  %v2322_v52 = vpop.permute.xlu1 %2321  ;;  %v2265_v40 = vpack.c.bf16 %v1707_v38, %v1706_v48  ;;  %v1708_v45 = vld [vmem:[%s3087_s11 + $0x30] sm:$0xff]  ;;  %v1709_v14 = vld [vmem:[%s3087_s11 + $0x38] sm:$0xff] }
 0x440   :  { %v2324_v46 = vunpack.i.h.bf16 %v2322_v52  ;;  %v2323_v47 = vunpack.i.l.bf16 %v2322_v52  ;;  %v1710_v52 = vld [vmem:[%s3087_s11 + $0x40] sm:$0xff] }
 0x441   :  { %2165 = vmatpush3.bf16.msra.mxu0 %v1357_v43  ;;  %v2268_v43 = vpack.c.bf16 %v1709_v14, %v1708_v45 }
 0x442   :  { %v1348_v49 = vsel %vm815_vm9, %v2867_v57, %v2324_v46  ;;  %v1347_v50 = vsel %vm815_vm9, %v2861_v56, %v2323_v47  ;;  %2166 = vmatprep.subr.bf16.mxu0 %v2413_v1  ;;  %v1851_v56 = vld [vmem:[%s3098_s22] ss:$0 sm:$0xff]  ;;  %v1711_v46 = vld [vmem:[%s3087_s11 + $0x48] sm:$0xff] }
 0x443   :  { %v1358_v51 = vpack.c.bf16 %v1348_v49, %v1347_v50  ;;  %v2327_v55 = vpop.permute.xlu0 %2326  ;;  %vm154_vm11 = vcmp.eq.s32.totalorder %v2775_v3, %v1851_v56  ;;  %v2271_v47 = vpack.c.bf16 %v1711_v46, %v1710_v52  ;;  %v1712_v49 = vld [vmem:[%s3087_s11 + $0x50] sm:$0xff]  ;;  %v1713_v50 = vld [vmem:[%s3087_s11 + $0x58] sm:$0xff] }
 0x444   :  { %v2329_v54 = vunpack.i.h.bf16 %v2327_v55  ;;  %v2328_v62 = vunpack.i.l.bf16 %v2327_v55  ;;  %vm1932_vm12 = vmpackc.low %vm154_vm11, %vm154_vm11  ;;  %v1714_v55 = vld [vmem:[%s3087_s11 + $0x60] sm:$0xff] }
 0x445   :  { %2167 = vmatpush3.bf16.msra.mxu0 %v1358_v51  ;;  %v2274_v51 = vpack.c.bf16 %v1713_v50, %v1712_v49 }
 0x446   :  { %v1350_v53 = vsel %vm815_vm9, %v2875_v59, %v2329_v54  ;;  %v1349_v63 = vsel %vm815_vm9, %v2869_v58, %v2328_v62  ;;  %2168 = vmatprep.subr.bf16.mxu0 %v2413_v1  ;;  %v1715_v54 = vld [vmem:[%s3087_s11 + $0x68] sm:$0xff] }
 0x447   :  { %v1359_v0 = vpack.c.bf16 %v1350_v53, %v1349_v63  ;;  %v2332_v57 = vpop.permute.xlu1 %2331  ;;  %v937_v9 = vpop.permute.xlu0 %936  ;;  %v2277_v62 = vpack.c.bf16 %v1715_v54, %v1714_v55  ;;  %v1577_v53 = vld [vmem:[%s3079_s3] sm:$0xff] }
 0x448   :  { %v2334_v2 = vunpack.i.h.bf16 %v2332_v57  ;;  %v2333_v5 = vunpack.i.l.bf16 %v2332_v57  ;;  %v939_v10 = vsel %vm815_vm9, %v2816_v37, %v937_v9  ;;  %v1498_v37 = vld [vmem:[%s3082_s6] sm:$0xff] }
 0x449   :  { %2169 = vmatpush3.bf16.msra.mxu0 %v1359_v0  ;;  %v2247_v29 = vpack.c.bf16 %v1499_v25, %v1498_v37 }
 0x44a   :  { %v1352_v6 = vsel %vm815_vm9, %v2883_v61, %v2334_v2  ;;  %v1351_v59 = vsel %vm815_vm9, %v2877_v60, %v2333_v5  ;;  %2170 = vmatprep.subr.bf16.mxu0 %v2413_v1  ;;  %v1365_v61 = vrot.slane %v939_v10, %v2778_v8 }
 0x44b   :  { %v1360_v58 = vpack.c.bf16 %v1352_v6, %v1351_v59 }
 0x44c   :  { %v1366_v60 = vmul.f32 %v1365_v61, %v1361_v11 }
 0x44d   :  { %2171 = vmatpush3.bf16.msra.mxu0 %v1360_v58 }
 0x44e   :  { %2246 = vmatprep.subr.bf16.mxu0 %v2420_v28 }
 0x450   :  { %2173 = vmatmul.mubr.msk.bf16.vlgmr.msra.gmra.mrb[32].mxu0 %vm1932_vm12, %v2419_v7 }
 0x451   :  { %2189 = vmatprep.mubr.msk.f32.mxu0 %vm2414_vm0, %v2413_v1  ;;  %2248 = vmatpush3.bf16.msra.mxu0 %v2247_v29 }
 0x452   :  { %2249 = vmatprep.subr.bf16.mxu0 %v2420_v28 }
 0x455   :  { %2251 = vmatpush3.bf16.msra.mxu0 %v2250_v15  ;;  %v1716_v15 = vld [vmem:[%s3087_s11 + $0x70] sm:$0xff] }
 0x456   :  { %2258 = vmatprep.subr.bf16.mxu0 %v2420_v28 }
 0x523   :  { %v1401_v12 = vpop.f32.mrb[32].mxu0 }
 0x524   :  { %v1407_v13 = vadd.f32 %v1401_v12, %v1366_v60  ;;  %v2174_v34 = vpop.f32.mrb[33].mxu0 }
 0x525   :  { %v1404_v3 = vpop.f32.mrb[34].mxu0 }
 0x526   :  { %1409 = vst.msk [vmem:[#allocation3] sm:$0xff] %vm127_vm10, %v1407_v13  ;;  %v2175_v20 = vpop.f32.mrb[35].mxu0 }
 0x52d   :  { %v1413_v21 = vld [vmem:[#allocation3] sm:$0xff] }
 0x52e   :  { %v1414_v23 = vmax.f32 %v1413_v21, 1e-30 }
 0x530   :  { %2383 = vrcp.f32 %v1414_v23 }
 0x53a   :  { %v2384_v24 = vpop.eup %2383 }
 0x53b   :  { %2179 = vmatmul.mubr.msk.f32.vlgmr.msra.gmra.mrb[38].mxu1 %vm815_vm9, %v2384_v24  ;;  %v1598_v24 = vld [vmem:[%s3089_s13] sm:$0x1] }
 0x53c   :  { %2200 = vmatprep.mubr.msk.f32.mxu1 %vm2414_vm0, %v2413_v1  ;;  %2254 = vmatpush3.bf16.msra.mxu1 %v2253_v30 }
 0x53d   :  { %2255 = vmatprep.subr.bf16.mxu1 %v2420_v28 }
 0x540   :  { %2257 = vmatpush3.bf16.msra.mxu1 %v2256_v33 }
 0x60e   :  { %v1489_v18 = vpop.f32.mrb[38].mxu1 }
 0x60f   :  { %1494 = vrot.lane.b32.xlu1 %v1489_v18, %s2418_s1  ;;  %v2180_v17 = vpop.f32.mrb[39].mxu1  ;;  %v1717_v18 = vld [vmem:[%s3087_s11 + $0x78] sm:$0xff]  ;;  %s2389_s1 = scalar_lea.vmem %s1841_s19, 128 }
 0x610   :  { %v2280_v17 = vpack.c.bf16 %v1717_v18, %v1716_v15  ;;  %p2390_p0 = scmp.ne.s32.totalorder %s1841_s19, %s2389_s1  ;;  %p2395_p2 = scmp.lt.s32.totalorder %s2389_s1, %s2389_s1 }
 0x612   :  { %p2396_p3 = por %p2395_p2, %p2394_p1 }
 0x614   :  { %p2397_p4 = pnand %p2396_p3, %p2390_p0 }
 0x681   :  { %v1495_v4 = vpop.permute.xlu1 %1494 }
 0x682   :  { %v1497_v19 = vmul.f32 %v1495_v4, %v1413_v21  ;;  %v1938_v4 = vld [vmem:[%s3086_s10] ss:$0 sm:$0xff] }
 0x684   :  { %1503 = vrot.lane.b32.xlu0 %v1497_v19, %s2421_s29 }
 0x6f6   :  { %v1504_v22 = vpop.permute.xlu0 %1503 }
 0x6f7   :  { %2190 = vmatmul.mubr.msk.f32.vlgmr.msra.gmra.mrb[36].mxu0 %vm80_vm1, %v1504_v22 }
 0x6f8   :  { %2235 = vmatprep.mubr.msk.f32.mxu0 %vm2414_vm0, %v2413_v1  ;;  %v1702_v1 = vld [vmem:[%s3087_s11] sm:$0xff] }
 0x6f9   :  { %v2259_v42 = vpack.c.bf16 %v1703_v44, %v1702_v1 }
 0x6fb   :  { %2260 = vmatpush3.bf16.msra.mxu0 %v2259_v42 }
 0x6fc   :  { %2261 = vmatprep.subr.bf16.mxu0 %v2420_v28 }
 0x6ff   :  { %2263 = vmatpush3.bf16.msra.mxu0 %v2262_v36 }
 0x700   :  { %2264 = vmatprep.subr.bf16.mxu0 %v2420_v28 }
 0x703   :  { %2266 = vmatpush3.bf16.msra.mxu0 %v2265_v40 }
 0x704   :  { %2267 = vmatprep.subr.bf16.mxu0 %v2420_v28 }
 0x707   :  { %2269 = vmatpush3.bf16.msra.mxu0 %v2268_v43 }
 0x708   :  { %2270 = vmatprep.subr.bf16.mxu0 %v2420_v28 }
 0x70b   :  { %2272 = vmatpush3.bf16.msra.mxu0 %v2271_v47 }
 0x70c   :  { %2273 = vmatprep.subr.bf16.mxu0 %v2420_v28 }
 0x70f   :  { %2275 = vmatpush3.bf16.msra.mxu0 %v2274_v51 }
 0x710   :  { %2276 = vmatprep.subr.bf16.mxu0 %v2420_v28 }
 0x713   :  { %2278 = vmatpush3.bf16.msra.mxu0 %v2277_v62  ;;  %v1814_v62 = vld [vmem:[%s3091_s15] sm:$0x1] }
 0x714   :  { %2279 = vmatprep.subr.bf16.mxu0 %v2420_v28  ;;  %v1937_v28 = vld [vmem:[%s3090_s14] ss:$0 sm:$0xff] }
 0x717   :  { %2281 = vmatpush3.bf16.msra.mxu0 %v2280_v17 }
 0x7ca   :  { %v1573_v63 = vpop.f32.mrb[36].mxu0 }
 0x7cb   :  { %v1578_v0 = vadd.f32 %v1577_v53, %v1573_v63  ;;  %v2191_v57 = vpop.f32.mrb[37].mxu0 }
 0x7cc   :  { %v1941_v57 = vld [vmem:[%s3092_s16] ss:$0 sm:$0xff] }
 0x7cd   :  { %v1579_v56 = vsel %vm80_vm1, %v1578_v0, 0.0 }
 0x7ce   :  { %v1580_v2 = vrot.slane %v1579_v56, 4 }
 0x7d0   :  { %v1581_v5 = vadd.f32 %v1580_v2, %v1579_v56 }
 0x7d2   :  { %v1582_v6 = vrot.slane %v1581_v5, 2 }
 0x7d4   :  { %v1583_v59 = vadd.f32 %v1582_v6, %v1581_v5 }
 0x7d6   :  { %v1584_v58 = vrot.slane %v1583_v59, 1 }
 0x7d8   :  { %v1585_v7 = vadd.f32 %v1584_v58, %v1583_v59 }
 0x7da   :  { %v1587_v9 = vmul.f32 0.125, %v1585_v7 }
 0x7dc   :  { %v1588_v10 = vsub.f32 %v1578_v0, %v1587_v9 }
 0x7de   :  { %v1589_v61 = vmul.f32 %v1588_v10, %v1588_v10 }
 0x7e0   :  { %v1590_v11 = vsel %vm80_vm1, %v1589_v61, 0.0 }
 0x7e1   :  { %v1591_v60 = vrot.slane %v1590_v11, 4 }
 0x7e3   :  { %v1592_v12 = vadd.f32 %v1591_v60, %v1590_v11 }
 0x7e5   :  { %v1593_v13 = vrot.slane %v1592_v12, 2 }
 0x7e7   :  { %v1594_v34 = vadd.f32 %v1593_v13, %v1592_v12 }
 0x7e9   :  { %v1595_v3 = vrot.slane %v1594_v34, 1 }
 0x7eb   :  { %v1596_v20 = vadd.f32 %v1595_v3, %v1594_v34 }
 0x7ed   :  { %v1597_v21 = vmul.f32 0.125, %v1596_v20 }
 0x7ef   :  { %v1599_v23 = vadd.f32 1e-05, %v1597_v21 }
 0x7f1   :  { %2385 = vrsqrt.f32 %v1599_v23 }
 0x7fb   :  { %v2386_v37 = vpop.eup %2385 }
 0x7fc   :  { %v1601_v25 = vmul.f32 %v2386_v37, %v1598_v24 }
 0x7fe   :  { %v1606_v26 = vrot.slane %v1601_v25, %v2778_v8 }
 0x800   :  { %v1608_v29 = vmul.f32 %v1606_v26, %v1588_v10 }
 0x802   :  { %v1616_v16 = vadd.f32 %v1937_v28, %v1608_v29 }
 0x804   :  { %2201 = vmatmul.mubr.msk.f32.vlgmr.msra.gmra.mrb[40].mxu1 %vm80_vm1, %v1616_v16 }
 0x8d7   :  { %v1697_v19 = vpop.f32.mrb[40].mxu1 }
 0x8d8   :  { %v1698_v22 = vadd.f32 %v1938_v4, %v1697_v19  ;;  %v2202_v31 = vpop.f32.mrb[41].mxu1 }
 0x8da   :  { %v1701_v41 = vmax.f32 %v1698_v22, 0.0 }
 0x8dc   :  { %2236 = vmatmul.mubr.f32.vlgmr.msra.gmra.mrb[38].mxu0 %v1701_v41 }
 0x9af   :  { %v1791_v30 = vpop.f32.mrb[38].mxu0 }
 0x9b0   :  { %v1792_v27 = vadd.f32 %v1940_v39, %v1791_v30  ;;  %v2237_v1 = vpop.f32.mrb[39].mxu0 }
 0x9b2   :  { %v1795_v44 = vadd.f32 %v1792_v27, %v1616_v16 }
 0x9b4   :  { %v1796_v32 = vsel %vm80_vm1, %v1795_v44, 0.0 }
 0x9b5   :  { %v1797_v33 = vrot.slane %v1796_v32, 4 }
 0x9b7   :  { %v1798_v42 = vadd.f32 %v1797_v33, %v1796_v32 }
 0x9b9   :  { %v1799_v35 = vrot.slane %v1798_v42, 2 }
 0x9bb   :  { %v1800_v36 = vadd.f32 %v1799_v35, %v1798_v42 }
 0x9bd   :  { %v1801_v48 = vrot.slane %v1800_v36, 1 }
 0x9bf   :  { %v1802_v38 = vadd.f32 %v1801_v48, %v1800_v36 }
 0x9c1   :  { %v1803_v40 = vmul.f32 0.125, %v1802_v38 }
 0x9c3   :  { %v1804_v45 = vsub.f32 %v1795_v44, %v1803_v40 }
 0x9c5   :  { %v1805_v14 = vmul.f32 %v1804_v45, %v1804_v45 }
 0x9c7   :  { %v1806_v43 = vsel %vm80_vm1, %v1805_v14, 0.0 }
 0x9c8   :  { %v1807_v52 = vrot.slane %v1806_v43, 4 }
 0x9ca   :  { %v1808_v46 = vadd.f32 %v1807_v52, %v1806_v43 }
 0x9cc   :  { %v1809_v47 = vrot.slane %v1808_v46, 2 }
 0x9ce   :  { %v1810_v49 = vadd.f32 %v1809_v47, %v1808_v46 }
 0x9d0   :  { %v1811_v50 = vrot.slane %v1810_v49, 1 }
 0x9d2   :  { %v1812_v51 = vadd.f32 %v1811_v50, %v1810_v49 }
 0x9d4   :  { %v1813_v55 = vmul.f32 0.125, %v1812_v51 }
 0x9d6   :  { %v1815_v54 = vadd.f32 1e-05, %v1813_v55 }
 0x9d8   :  { %2387 = vrsqrt.f32 %v1815_v54 }
 0x9e2   :  { %v2388_v53 = vpop.eup %2387 }
 0x9e3   :  { %v1817_v63 = vmul.f32 %v2388_v53, %v1814_v62 }
 0x9e5   :  { %v1822_v0 = vrot.slane %v1817_v63, %v2778_v8 }
 0x9e7   :  { %v1824_v56 = vmul.f32 %v1822_v0, %v1804_v45 }
 0x9e9   :  { %v1832_v2 = vadd.f32 %v1941_v57, %v1824_v56 }
 0x9eb   :  { %1833 = vst.msk [vmem:[#allocation5] sm:$0xff] %vm80_vm1, %v1832_v2 }
 0x9ec   :  { %2400 = shalt.err (!%p2397_p4)
}
 0x9ed   :  { %s2401_s20 = scalar_lea.hbm %s3093_s17, 128 }
 0x9ee   :  { %p2402_p5 = scmp.ne.s32.totalorder %s3093_s17, %s2401_s20  ;;  %p2405_p6 = scmp.lt.u32.totalorder %s2401_s20, %s3093_s17 }
 0x9f0   :  { %p2407_p7 = pnand %p2405_p6, %p2402_p5 }
 0x9f2   :  { %2410 = shalt.err (!%p2407_p7)
}
 0x9f3   :  { %1843 = dma.vmem_to_hbm [thread:$0]  %s1841_s19, 128, %s3093_s17, [#allocation6]  }
 0x9f4   :  { %2411 = dma.done.wait [#allocation6], 128  }
 0x9f5   :  { %2412 = vsyncadd [#allocation6], 4294967168 }
 0x9f6   :  { %1847 = vsyncpa [#allocation6], 1 }

</bundles_post_ra>
